<compile_context>
chip_gen: v7x
topology: tpu7x:2x2x1
jax: 0.10.0
libtpu: 0.0.40
codegen_flags: <defaults>
</compile_context>

<pallas_src>
import functools

import jax
import jax.numpy as jnp
from jax.experimental import pallas as pl
from jax.experimental.pallas import tpu as pltpu

UNITS = 128


# ----------------------------------------------------------------------------
# Kernel
# ----------------------------------------------------------------------------
def _critic_kernel(
    ffin_ref,      # (Bp, Dff)      VMEM   concat(env, goal, action, state)
    hist_ref,      # (T*Bp, Drec)   VMEM   time-major flattened history
    wff_ref,       # (Dff, H)       VMEM
    wih_ref,       # (Drec, 4H)     VMEM   LSTM input->hidden, gates (i,f,o,g)
    whh_hbm,       # (H, 4H)        ANY    LSTM hidden->hidden (manual DMA)
    w1_hbm,        # (2H, H)        ANY    merged layer-1 weight (manual DMA)
    w2_hbm,        # (H, H)         ANY    merged layer-2 weight (manual DMA)
    w3_ref,        # (1, H)         VMEM   final layer weight row (f32)
    bias_ref,      # (1, 7H)        VMEM   [b_ff | b1 | b2 | b_lstm(4H)] (f32)
    b3_ref,        # (1,)           SMEM   final layer bias (f32)
    out_ref,       # (Bp, 1)
    whh_buf,       # scratch VMEM (H, 4H)  compute dtype
    w1_buf,        # scratch VMEM (2H, H)  compute dtype
    w2_buf,        # scratch VMEM (H, H)   compute dtype
    sem,           # scratch DMA semaphores (3,)
    *,
    Bp, T, H, compute_dtype,
):
    f32 = jnp.float32
    cdt = compute_dtype

    # Kick off the large-weight DMAs; they overlap with the ff / input
    # projection matmuls and the early part of the LSTM recurrence.
    cp_whh = pltpu.make_async_copy(whh_hbm, whh_buf, sem.at[0])
    cp_w1 = pltpu.make_async_copy(w1_hbm, w1_buf, sem.at[1])
    cp_w2 = pltpu.make_async_copy(w2_hbm, w2_buf, sem.at[2])
    cp_whh.start()
    cp_w1.start()
    cp_w2.start()

    b_ff = bias_ref[:, 0:H]
    b1 = bias_ref[:, H:2 * H]
    b2 = bias_ref[:, 2 * H:3 * H]
    b_lstm = bias_ref[:, 3 * H:7 * H]

    # --- feed-forward branch: Linear + ReLU ---------------------------------
    ff = jnp.dot(ffin_ref[...], wff_ref[...], preferred_element_type=f32)
    ff = jnp.maximum(ff + b_ff, 0.0)                               # (Bp, H) f32

    # --- recurrent branch: single-layer LSTM, final hidden state ------------
    # Input projection for ALL timesteps hoisted into one MXU op (off the
    # serial chain); LSTM bias folded in here.
    gates_x = jnp.dot(hist_ref[...], wih_ref[...],
                      preferred_element_type=f32) + b_lstm         # (T*Bp, 4H)

    def gate_step(g_t, c):
        sig = jax.nn.sigmoid(g_t[:, 0:3 * H])       # one wide EUP launch (i,f,o)
        i_g = sig[:, 0:H]
        f_g = sig[:, H:2 * H]
        o_g = sig[:, 2 * H:3 * H]
        g_g = jnp.tanh(g_t[:, 3 * H:4 * H])
        c = f_g * c + i_g * g_g
        h = o_g * jnp.tanh(c)                                      # (Bp, H) f32
        return h, c

    # t = 0: h0 == c0 == 0, so the h @ W_hh term vanishes -> no matmul and no
    # need to wait on the W_hh DMA yet.
    h, c = gate_step(gates_x[0:Bp, :], jnp.zeros((Bp, H), f32))

    cp_whh.wait()
    w_hh = whh_buf[...]
    # Static unroll: T is small. For large T switch to
    # lax.fori_loop(..., unroll=True) to bound live ranges.
    for t in range(1, T):
        # Bp is a multiple of 8, so this f32 slice is sublane-aligned (view).
        g_t = gates_x[t * Bp:(t + 1) * Bp, :] + jnp.dot(
            h.astype(cdt), w_hh, preferred_element_type=f32)       # (Bp, 4H)
        h, c = gate_step(g_t, c)

    # --- merged branch: Linear+ReLU, Linear+ReLU, Linear(->1) ---------------
    # W1 split into its ff / recurrent row blocks: no (Bp, 2H) concat.
    cp_w1.wait()
    m1 = jnp.dot(ff.astype(cdt), w1_buf[0:H, :], preferred_element_type=f32)
    m1 = m1 + jnp.dot(h.astype(cdt), w1_buf[H:2 * H, :],
                      preferred_element_type=f32)
    m1 = jnp.maximum(m1 + b1, 0.0)

    cp_w2.wait()
    m2 = jnp.maximum(
        jnp.dot(m1.astype(cdt), w2_buf[...], preferred_element_type=f32) + b2,
        0.0)

    # Final (H, 1) projection: VPU multiply + XLU lane reduction instead of an
    # N=1 MXU matmul.
    out = jnp.sum(m2 * w3_ref[...], axis=-1, keepdims=True) + b3_ref[0]
    out_ref[...] = out.astype(out_ref.dtype)                       # (Bp, 1)


# ----------------------------------------------------------------------------
# Parameter repacking: PyTorch layout -> kernel layout
# ----------------------------------------------------------------------------
def _pack_params(params, compute_dtype):
    H = UNITS
    f32 = jnp.float32
    cdt = compute_dtype

    def reorder_ifgo_to_ifog(x):   # permute PyTorch gate blocks (i,f,g,o)->(i,f,o,g)
        return jnp.concatenate(
            [x[0:H], x[H:2 * H], x[3 * H:4 * H], x[2 * H:3 * H]], axis=0)

    wih = reorder_ifgo_to_ifog(params["lstm.weight_ih_l0"]).T          # (Drec, 4H)
    whh = reorder_ifgo_to_ifog(params["lstm.weight_hh_l0"]).T          # (H, 4H)
    b_lstm = reorder_ifgo_to_ifog(
        params["lstm.bias_ih_l0"] + params["lstm.bias_hh_l0"])         # (4H,)

    bias = jnp.concatenate(
        [params["ff.bias"], params["m1.bias"], params["m2.bias"], b_lstm]
    ).astype(f32)[None, :]                                             # (1, 7H)

    return {
        "wff": params["ff.weight"].T.astype(cdt),                      # (Dff, H)
        "wih": wih.astype(cdt),
        "whh": whh.astype(cdt),
        "w1": params["m1.weight"].T.astype(cdt),                       # (2H, H)
        "w2": params["m2.weight"].T.astype(cdt),                       # (H, H)
        "w3": params["m3.weight"].astype(f32),                         # (1, H)
        "bias": bias,
        "b3": params["m3.bias"].astype(f32),                           # (1,)
    }


# ----------------------------------------------------------------------------
# Wrapper
# ----------------------------------------------------------------------------
def critic_forward(params, input_env, input_goal, input_action, input_state,
                   input_history, *, compute_dtype=jnp.bfloat16):
    H = UNITS
    f32 = jnp.float32
    cdt = compute_dtype

    ff_input = jnp.concatenate(
        [input_env, input_goal, input_action, input_state], axis=1).astype(f32)
    B = ff_input.shape[0]
    _, T, Drec = input_history.shape

    # Pad batch to the f32 sublane count (multiple of 8) so per-timestep gate
    # slices inside the kernel are tile-aligned. Padded rows are zero-filled
    # (finite, no cross-batch mixing); they are dropped after the call.
    Bp = max(8, ((B + 7) // 8) * 8)
    hist = input_history.astype(f32)
    if Bp != B:
        pad = Bp - B
        ff_input = jnp.pad(ff_input, ((0, pad), (0, 0)))
        hist = jnp.pad(hist, ((0, pad), (0, 0), (0, 0)))

    # Time-major flatten: row t*Bp + b corresponds to (batch b, time t).
    hist_tm = jnp.transpose(hist, (1, 0, 2)).reshape(T * Bp, Drec)

    kp = _pack_params(params, cdt)

    kernel = functools.partial(_critic_kernel, Bp=Bp, T=T, H=H,
                               compute_dtype=cdt)
    vmem = pl.BlockSpec(memory_space=pltpu.MemorySpace.VMEM)
    smem = pl.BlockSpec(memory_space=pltpu.MemorySpace.SMEM)
    hbm = pl.BlockSpec(memory_space=pl.ANY)

    out = pl.pallas_call(
        kernel,
        out_shape=jax.ShapeDtypeStruct((Bp, 1), f32),
        in_specs=[vmem, vmem, vmem, vmem,   # ffin, hist, wff, wih
                  hbm, hbm, hbm,            # whh, w1, w2 (manual DMA)
                  vmem, vmem, smem],        # w3, bias, b3
        out_specs=vmem,
        scratch_shapes=[
            pltpu.VMEM((H, 4 * H), cdt),    # whh_buf
            pltpu.VMEM((2 * H, H), cdt),    # w1_buf
            pltpu.VMEM((H, H), cdt),        # w2_buf
            pltpu.SemaphoreType.DMA((3,)),
        ],
    )(
        ff_input.astype(cdt),
        hist_tm.astype(cdt),
        kp["wff"], kp["wih"], kp["whh"],
        kp["w1"], kp["w2"], kp["w3"],
        kp["bias"], kp["b3"],
    )
    return out[:B]


# ----------------------------------------------------------------------------
# Deterministic parameter construction (mirrors the PyTorch module's layout)
# ----------------------------------------------------------------------------
def init_params(key, dim_state, dim_goal, dim_action, dim_env):
    H = UNITS
    dff = dim_env + dim_goal + dim_action + dim_state
    drec = dim_action + dim_state

    def uni(k, shape, bound):
        return jax.random.uniform(k, shape, jnp.float32, -bound, bound)

    ks = jax.random.split(key, 14)
    inv = lambda n: 1.0 / float(n) ** 0.5

    return {
        # ff_branch: Linear(dff, H)  — PyTorch (out, in) layout
        "ff.weight": uni(ks[0], (H, dff), inv(dff)),
        "ff.bias": uni(ks[1], (H,), inv(dff)),
        # LSTM(drec, H) — PyTorch gate order rows (i, f, g, o)
        "lstm.weight_ih_l0": uni(ks[2], (4 * H, drec), inv(H)),
        "lstm.weight_hh_l0": uni(ks[3], (4 * H, H), inv(H)),
        "lstm.bias_ih_l0": uni(ks[4], (4 * H,), inv(H)),
        "lstm.bias_hh_l0": uni(ks[5], (4 * H,), inv(H)),
        # merged_branch: Linear(2H, H), Linear(H, H), Linear(H, 1)
        "m1.weight": uni(ks[6], (H, 2 * H), inv(2 * H)),
        "m1.bias": uni(ks[7], (H,), inv(2 * H)),
        "m2.weight": uni(ks[8], (H, H), inv(H)),
        "m2.bias": uni(ks[9], (H,), inv(H)),
        # final layer: custom uniform(-0.003, 0.003) weight init (as in PyTorch)
        "m3.weight": uni(ks[10], (1, H), 0.003),
        "m3.bias": uni(ks[11], (1,), inv(H)),
    }


# ----------------------------------------------------------------------------
# Pure-JAX reference (PyTorch semantics, PyTorch layout / gate order)
# ----------------------------------------------------------------------------
def critic_forward_ref(params, input_env, input_goal, input_action, input_state,
                       input_history):
    H = UNITS
    x = jnp.concatenate([input_env, input_goal, input_action, input_state],
                        axis=1)
    ff = jax.nn.relu(x @ params["ff.weight"].T + params["ff.bias"])

    B, T, _ = input_history.shape
    w_ih = params["lstm.weight_ih_l0"]
    w_hh = params["lstm.weight_hh_l0"]
    b = params["lstm.bias_ih_l0"] + params["lstm.bias_hh_l0"]
    h = jnp.zeros((B, H), jnp.float32)
    c = jnp.zeros((B, H), jnp.float32)
    for t in range(T):
        g = input_history[:, t, :] @ w_ih.T + h @ w_hh.T + b
        i_g = jax.nn.sigmoid(g[:, 0 * H:1 * H])
        f_g = jax.nn.sigmoid(g[:, 1 * H:2 * H])
        g_g = jnp.tanh(g[:, 2 * H:3 * H])
        o_g = jax.nn.sigmoid(g[:, 3 * H:4 * H])
        c = f_g * c + i_g * g_g
        h = o_g * jnp.tanh(c)

    m_in = jnp.concatenate([ff, h], axis=1)
    m1 = jax.nn.relu(m_in @ params["m1.weight"].T + params["m1.bias"])
    m2 = jax.nn.relu(m1 @ params["m2.weight"].T + params["m2.bias"])
    return m2 @ params["m3.weight"].T + params["m3.bias"]


# ----------------------------------------------------------------------------
if __name__ == "__main__":
    batch = 2
    dim_state, dim_goal, dim_action, dim_env = 6, 4, 3, 5
    seq_len = 8

    key = jax.random.PRNGKey(0)
    kp, ke, kg, ka, ks, kh = jax.random.split(key, 6)

    params = init_params(kp, dim_state, dim_goal, dim_action, dim_env)

    input_env = jax.random.normal(ke, (batch, dim_env), jnp.float32)
    input_goal = jax.random.normal(kg, (batch, dim_goal), jnp.float32)
    input_action = jax.random.normal(ka, (batch, dim_action), jnp.float32)
    input_state = jax.random.normal(ks, (batch, dim_state), jnp.float32)
    input_history = jax.random.normal(
        kh, (batch, seq_len, dim_action + dim_state), jnp.float32)

    ref = critic_forward_ref(params, input_env, input_goal, input_action,
                             input_state, input_history)

    # f32 path (exact semantics check)
    fwd_f32 = jax.jit(
        functools.partial(critic_forward, compute_dtype=jnp.float32))
    out_f32 = jax.block_until_ready(
        fwd_f32(params, input_env, input_goal, input_action, input_state,
                input_history))
    assert out_f32.shape == (batch, 1)
    assert jnp.allclose(out_f32, ref, atol=1e-4, rtol=1e-4), (out_f32, ref)

    # Default path: bf16 matmul operands, f32 accumulation + f32 gates/state.
    fwd = jax.jit(critic_forward)
    out = jax.block_until_ready(
        fwd(params, input_env, input_goal, input_action, input_state,
            input_history))
    assert out.shape == (batch, 1)
    assert bool(jnp.all(jnp.isfinite(out)))
    assert jnp.allclose(out, ref, atol=5e-2, rtol=5e-2), (out, ref)

    print("KERNEL_OK")
</pallas_src>

<mosaic_0001>
module attributes {stable_mosaic.version = 11 : i64} {
  func.func @_critic_kernel(%arg0: memref<8x18xf32, #tpu.memory_space<vmem>>, %arg1: memref<64x9xf32, #tpu.memory_space<vmem>>, %arg2: memref<18x128xf32, #tpu.memory_space<vmem>>, %arg3: memref<9x512xf32, #tpu.memory_space<vmem>>, %arg4: memref<128x512xf32, #tpu.memory_space<any>>, %arg5: memref<256x128xf32, #tpu.memory_space<any>>, %arg6: memref<128x128xf32, #tpu.memory_space<any>>, %arg7: memref<1x128xf32, #tpu.memory_space<vmem>>, %arg8: memref<1x896xf32, #tpu.memory_space<vmem>>, %arg9: memref<1xf32, #tpu.memory_space<smem>>, %arg10: memref<8x1xf32, #tpu.memory_space<vmem>>, %arg11: memref<128x512xf32, #tpu.memory_space<vmem>>, %arg12: memref<256x128xf32, #tpu.memory_space<vmem>>, %arg13: memref<128x128xf32, #tpu.memory_space<vmem>>, %arg14: memref<3x!tpu.dma_semaphore, #tpu.memory_space<semaphore_mem>>) attributes {dimension_semantics = [], scalar_prefetch = 0 : i64, scratch_operands = 4 : i64, tpu.core_type = #tpu.core_type<tc>} {
    %c0_i32 = arith.constant 0 : i32
    %0 = tpu.memref_slice %arg14[%c0_i32] : memref<3x!tpu.dma_semaphore, #tpu.memory_space<semaphore_mem>> -> memref<1x!tpu.dma_semaphore, #tpu.memory_space<semaphore_mem>>
    %1 = tpu.memref_squeeze %0 : memref<1x!tpu.dma_semaphore, #tpu.memory_space<semaphore_mem>> -> memref<!tpu.dma_semaphore, #tpu.memory_space<semaphore_mem>>
    tpu.enqueue_dma source(%arg4 : memref<128x512xf32, #tpu.memory_space<any>>) target(%arg11 : memref<128x512xf32, #tpu.memory_space<vmem>>) target_semaphore(%1 : memref<!tpu.dma_semaphore, #tpu.memory_space<semaphore_mem>>)
    %c1_i32 = arith.constant 1 : i32
    %2 = tpu.memref_slice %arg14[%c1_i32] : memref<3x!tpu.dma_semaphore, #tpu.memory_space<semaphore_mem>> -> memref<1x!tpu.dma_semaphore, #tpu.memory_space<semaphore_mem>>
    %3 = tpu.memref_squeeze %2 : memref<1x!tpu.dma_semaphore, #tpu.memory_space<semaphore_mem>> -> memref<!tpu.dma_semaphore, #tpu.memory_space<semaphore_mem>>
    tpu.enqueue_dma source(%arg5 : memref<256x128xf32, #tpu.memory_space<any>>) target(%arg12 : memref<256x128xf32, #tpu.memory_space<vmem>>) target_semaphore(%3 : memref<!tpu.dma_semaphore, #tpu.memory_space<semaphore_mem>>)
    %c2_i32 = arith.constant 2 : i32
    %4 = tpu.memref_slice %arg14[%c2_i32] : memref<3x!tpu.dma_semaphore, #tpu.memory_space<semaphore_mem>> -> memref<1x!tpu.dma_semaphore, #tpu.memory_space<semaphore_mem>>
    %5 = tpu.memref_squeeze %4 : memref<1x!tpu.dma_semaphore, #tpu.memory_space<semaphore_mem>> -> memref<!tpu.dma_semaphore, #tpu.memory_space<semaphore_mem>>
    tpu.enqueue_dma source(%arg6 : memref<128x128xf32, #tpu.memory_space<any>>) target(%arg13 : memref<128x128xf32, #tpu.memory_space<vmem>>) target_semaphore(%5 : memref<!tpu.dma_semaphore, #tpu.memory_space<semaphore_mem>>)
    %c0 = arith.constant 0 : index
    %c0_0 = arith.constant 0 : index
    %6 = vector.load %arg8[%c0, %c0_0] : memref<1x896xf32, #tpu.memory_space<vmem>>, vector<1x128xf32>
    %c0_1 = arith.constant 0 : index
    %c128 = arith.constant 128 : index
    %7 = vector.load %arg8[%c0_1, %c128] : memref<1x896xf32, #tpu.memory_space<vmem>>, vector<1x128xf32>
    %c0_2 = arith.constant 0 : index
    %c256 = arith.constant 256 : index
    %8 = vector.load %arg8[%c0_2, %c256] : memref<1x896xf32, #tpu.memory_space<vmem>>, vector<1x128xf32>
    %c0_3 = arith.constant 0 : index
    %c384 = arith.constant 384 : index
    %9 = vector.load %arg8[%c0_3, %c384] : memref<1x896xf32, #tpu.memory_space<vmem>>, vector<1x512xf32>
    %c0_4 = arith.constant 0 : index
    %c0_5 = arith.constant 0 : index
    %10 = vector.load %arg0[%c0_4, %c0_5] : memref<8x18xf32, #tpu.memory_space<vmem>>, vector<8x18xf32>
    %c0_6 = arith.constant 0 : index
    %c0_7 = arith.constant 0 : index
    %11 = vector.load %arg2[%c0_6, %c0_7] : memref<18x128xf32, #tpu.memory_space<vmem>>, vector<18x128xf32>
    %cst = arith.constant dense<0.000000e+00> : vector<8x128xf32>
    %12 = tpu.matmul %10, %11, %cst {dimension_numbers = #tpu.dot_dimension_numbers<[1], [0], [0], [1], [0, 0, 1, 1], [], []>} : vector<8x18xf32>, vector<18x128xf32>, vector<8x128xf32> -> vector<8x128xf32>
    %13 = vector.broadcast %6 : vector<1x128xf32> to vector<8x128xf32>
    %14 = arith.addf %12, %13 : vector<8x128xf32>
    %cst_8 = arith.constant 0.000000e+00 : f32
    %15 = vector.broadcast %cst_8 : f32 to vector<8x128xf32>
    %16 = arith.maximumf %14, %15 : vector<8x128xf32>
    %c0_9 = arith.constant 0 : index
    %c0_10 = arith.constant 0 : index
    %17 = vector.load %arg1[%c0_9, %c0_10] : memref<64x9xf32, #tpu.memory_space<vmem>>, vector<64x9xf32>
    %c0_11 = arith.constant 0 : index
    %c0_12 = arith.constant 0 : index
    %18 = vector.load %arg3[%c0_11, %c0_12] : memref<9x512xf32, #tpu.memory_space<vmem>>, vector<9x512xf32>
    %cst_13 = arith.constant dense<0.000000e+00> : vector<64x512xf32>
    %19 = tpu.matmul %17, %18, %cst_13 {dimension_numbers = #tpu.dot_dimension_numbers<[1], [0], [0], [1], [0, 0, 1, 1], [], []>} : vector<64x9xf32>, vector<9x512xf32>, vector<64x512xf32> -> vector<64x512xf32>
    %20 = vector.broadcast %9 : vector<1x512xf32> to vector<64x512xf32>
    %21 = arith.addf %19, %20 : vector<64x512xf32>
    %22 = vector.extract_strided_slice %21 {offsets = [0, 0], sizes = [8, 512], strides = [1, 1]} : vector<64x512xf32> to vector<8x512xf32>
    %cst_14 = arith.constant 0.000000e+00 : f32
    %23 = vector.broadcast %cst_14 : f32 to vector<8x128xf32>
    %24 = vector.extract_strided_slice %22 {offsets = [0, 0], sizes = [8, 384], strides = [1, 1]} : vector<8x512xf32> to vector<8x384xf32>
    %25 = arith.negf %24 : vector<8x384xf32>
    %26 = math.exp %25 : vector<8x384xf32>
    %cst_15 = arith.constant 1.000000e+00 : f32
    %27 = vector.broadcast %cst_15 : f32 to vector<8x384xf32>
    %28 = arith.addf %27, %26 : vector<8x384xf32>
    %29 = arith.divf %27, %28 : vector<8x384xf32>
    %30 = vector.extract_strided_slice %29 {offsets = [0, 0], sizes = [8, 128], strides = [1, 1]} : vector<8x384xf32> to vector<8x128xf32>
    %31 = vector.extract_strided_slice %29 {offsets = [0, 128], sizes = [8, 128], strides = [1, 1]} : vector<8x384xf32> to vector<8x128xf32>
    %32 = vector.extract_strided_slice %29 {offsets = [0, 256], sizes = [8, 128], strides = [1, 1]} : vector<8x384xf32> to vector<8x128xf32>
    %33 = vector.extract_strided_slice %22 {offsets = [0, 384], sizes = [8, 128], strides = [1, 1]} : vector<8x512xf32> to vector<8x128xf32>
    %34 = math.tanh %33 : vector<8x128xf32>
    %35 = arith.mulf %31, %23 : vector<8x128xf32>
    %36 = arith.mulf %30, %34 : vector<8x128xf32>
    %37 = arith.addf %35, %36 : vector<8x128xf32>
    %38 = math.tanh %37 : vector<8x128xf32>
    %39 = arith.mulf %32, %38 : vector<8x128xf32>
    %c0_i32_16 = arith.constant 0 : i32
    %40 = tpu.memref_slice %arg14[%c0_i32_16] : memref<3x!tpu.dma_semaphore, #tpu.memory_space<semaphore_mem>> -> memref<1x!tpu.dma_semaphore, #tpu.memory_space<semaphore_mem>>
    %41 = tpu.memref_squeeze %40 : memref<1x!tpu.dma_semaphore, #tpu.memory_space<semaphore_mem>> -> memref<!tpu.dma_semaphore, #tpu.memory_space<semaphore_mem>>
    tpu.wait_dma2 semaphore(%41 : memref<!tpu.dma_semaphore, #tpu.memory_space<semaphore_mem>>) src(%arg4 : memref<128x512xf32, #tpu.memory_space<any>>) dst(%arg11 : memref<128x512xf32, #tpu.memory_space<vmem>>)
    %c0_17 = arith.constant 0 : index
    %c0_18 = arith.constant 0 : index
    %42 = vector.load %arg11[%c0_17, %c0_18] : memref<128x512xf32, #tpu.memory_space<vmem>>, vector<128x512xf32>
    %43 = vector.extract_strided_slice %21 {offsets = [8, 0], sizes = [8, 512], strides = [1, 1]} : vector<64x512xf32> to vector<8x512xf32>
    %cst_19 = arith.constant dense<0.000000e+00> : vector<8x512xf32>
    %44 = tpu.matmul %39, %42, %cst_19 {dimension_numbers = #tpu.dot_dimension_numbers<[1], [0], [0], [1], [0, 0, 1, 1], [], []>} : vector<8x128xf32>, vector<128x512xf32>, vector<8x512xf32> -> vector<8x512xf32>
    %45 = arith.addf %43, %44 : vector<8x512xf32>
    %46 = vector.extract_strided_slice %45 {offsets = [0, 0], sizes = [8, 384], strides = [1, 1]} : vector<8x512xf32> to vector<8x384xf32>
    %47 = arith.negf %46 : vector<8x384xf32>
    %48 = math.exp %47 : vector<8x384xf32>
    %cst_20 = arith.constant 1.000000e+00 : f32
    %49 = vector.broadcast %cst_20 : f32 to vector<8x384xf32>
    %50 = arith.addf %49, %48 : vector<8x384xf32>
    %51 = arith.divf %49, %50 : vector<8x384xf32>
    %52 = vector.extract_strided_slice %51 {offsets = [0, 0], sizes = [8, 128], strides = [1, 1]} : vector<8x384xf32> to vector<8x128xf32>
    %53 = vector.extract_strided_slice %51 {offsets = [0, 128], sizes = [8, 128], strides = [1, 1]} : vector<8x384xf32> to vector<8x128xf32>
    %54 = vector.extract_strided_slice %51 {offsets = [0, 256], sizes = [8, 128], strides = [1, 1]} : vector<8x384xf32> to vector<8x128xf32>
    %55 = vector.extract_strided_slice %45 {offsets = [0, 384], sizes = [8, 128], strides = [1, 1]} : vector<8x512xf32> to vector<8x128xf32>
    %56 = math.tanh %55 : vector<8x128xf32>
    %57 = arith.mulf %53, %37 : vector<8x128xf32>
    %58 = arith.mulf %52, %56 : vector<8x128xf32>
    %59 = arith.addf %57, %58 : vector<8x128xf32>
    %60 = math.tanh %59 : vector<8x128xf32>
    %61 = arith.mulf %54, %60 : vector<8x128xf32>
    %62 = vector.extract_strided_slice %21 {offsets = [16, 0], sizes = [8, 512], strides = [1, 1]} : vector<64x512xf32> to vector<8x512xf32>
    %cst_21 = arith.constant dense<0.000000e+00> : vector<8x512xf32>
    %63 = tpu.matmul %61, %42, %cst_21 {dimension_numbers = #tpu.dot_dimension_numbers<[1], [0], [0], [1], [0, 0, 1, 1], [], []>} : vector<8x128xf32>, vector<128x512xf32>, vector<8x512xf32> -> vector<8x512xf32>
    %64 = arith.addf %62, %63 : vector<8x512xf32>
    %65 = vector.extract_strided_slice %64 {offsets = [0, 0], sizes = [8, 384], strides = [1, 1]} : vector<8x512xf32> to vector<8x384xf32>
    %66 = arith.negf %65 : vector<8x384xf32>
    %67 = math.exp %66 : vector<8x384xf32>
    %cst_22 = arith.constant 1.000000e+00 : f32
    %68 = vector.broadcast %cst_22 : f32 to vector<8x384xf32>
    %69 = arith.addf %68, %67 : vector<8x384xf32>
    %70 = arith.divf %68, %69 : vector<8x384xf32>
    %71 = vector.extract_strided_slice %70 {offsets = [0, 0], sizes = [8, 128], strides = [1, 1]} : vector<8x384xf32> to vector<8x128xf32>
    %72 = vector.extract_strided_slice %70 {offsets = [0, 128], sizes = [8, 128], strides = [1, 1]} : vector<8x384xf32> to vector<8x128xf32>
    %73 = vector.extract_strided_slice %70 {offsets = [0, 256], sizes = [8, 128], strides = [1, 1]} : vector<8x384xf32> to vector<8x128xf32>
    %74 = vector.extract_strided_slice %64 {offsets = [0, 384], sizes = [8, 128], strides = [1, 1]} : vector<8x512xf32> to vector<8x128xf32>
    %75 = math.tanh %74 : vector<8x128xf32>
    %76 = arith.mulf %72, %59 : vector<8x128xf32>
    %77 = arith.mulf %71, %75 : vector<8x128xf32>
    %78 = arith.addf %76, %77 : vector<8x128xf32>
    %79 = math.tanh %78 : vector<8x128xf32>
    %80 = arith.mulf %73, %79 : vector<8x128xf32>
    %81 = vector.extract_strided_slice %21 {offsets = [24, 0], sizes = [8, 512], strides = [1, 1]} : vector<64x512xf32> to vector<8x512xf32>
    %cst_23 = arith.constant dense<0.000000e+00> : vector<8x512xf32>
    %82 = tpu.matmul %80, %42, %cst_23 {dimension_numbers = #tpu.dot_dimension_numbers<[1], [0], [0], [1], [0, 0, 1, 1], [], []>} : vector<8x128xf32>, vector<128x512xf32>, vector<8x512xf32> -> vector<8x512xf32>
    %83 = arith.addf %81, %82 : vector<8x512xf32>
    %84 = vector.extract_strided_slice %83 {offsets = [0, 0], sizes = [8, 384], strides = [1, 1]} : vector<8x512xf32> to vector<8x384xf32>
    %85 = arith.negf %84 : vector<8x384xf32>
    %86 = math.exp %85 : vector<8x384xf32>
    %cst_24 = arith.constant 1.000000e+00 : f32
    %87 = vector.broadcast %cst_24 : f32 to vector<8x384xf32>
    %88 = arith.addf %87, %86 : vector<8x384xf32>
    %89 = arith.divf %87, %88 : vector<8x384xf32>
    %90 = vector.extract_strided_slice %89 {offsets = [0, 0], sizes = [8, 128], strides = [1, 1]} : vector<8x384xf32> to vector<8x128xf32>
    %91 = vector.extract_strided_slice %89 {offsets = [0, 128], sizes = [8, 128], strides = [1, 1]} : vector<8x384xf32> to vector<8x128xf32>
    %92 = vector.extract_strided_slice %89 {offsets = [0, 256], sizes = [8, 128], strides = [1, 1]} : vector<8x384xf32> to vector<8x128xf32>
    %93 = vector.extract_strided_slice %83 {offsets = [0, 384], sizes = [8, 128], strides = [1, 1]} : vector<8x512xf32> to vector<8x128xf32>
    %94 = math.tanh %93 : vector<8x128xf32>
    %95 = arith.mulf %91, %78 : vector<8x128xf32>
    %96 = arith.mulf %90, %94 : vector<8x128xf32>
    %97 = arith.addf %95, %96 : vector<8x128xf32>
    %98 = math.tanh %97 : vector<8x128xf32>
    %99 = arith.mulf %92, %98 : vector<8x128xf32>
    %100 = vector.extract_strided_slice %21 {offsets = [32, 0], sizes = [8, 512], strides = [1, 1]} : vector<64x512xf32> to vector<8x512xf32>
    %cst_25 = arith.constant dense<0.000000e+00> : vector<8x512xf32>
    %101 = tpu.matmul %99, %42, %cst_25 {dimension_numbers = #tpu.dot_dimension_numbers<[1], [0], [0], [1], [0, 0, 1, 1], [], []>} : vector<8x128xf32>, vector<128x512xf32>, vector<8x512xf32> -> vector<8x512xf32>
    %102 = arith.addf %100, %101 : vector<8x512xf32>
    %103 = vector.extract_strided_slice %102 {offsets = [0, 0], sizes = [8, 384], strides = [1, 1]} : vector<8x512xf32> to vector<8x384xf32>
    %104 = arith.negf %103 : vector<8x384xf32>
    %105 = math.exp %104 : vector<8x384xf32>
    %cst_26 = arith.constant 1.000000e+00 : f32
    %106 = vector.broadcast %cst_26 : f32 to vector<8x384xf32>
    %107 = arith.addf %106, %105 : vector<8x384xf32>
    %108 = arith.divf %106, %107 : vector<8x384xf32>
    %109 = vector.extract_strided_slice %108 {offsets = [0, 0], sizes = [8, 128], strides = [1, 1]} : vector<8x384xf32> to vector<8x128xf32>
    %110 = vector.extract_strided_slice %108 {offsets = [0, 128], sizes = [8, 128], strides = [1, 1]} : vector<8x384xf32> to vector<8x128xf32>
    %111 = vector.extract_strided_slice %108 {offsets = [0, 256], sizes = [8, 128], strides = [1, 1]} : vector<8x384xf32> to vector<8x128xf32>
    %112 = vector.extract_strided_slice %102 {offsets = [0, 384], sizes = [8, 128], strides = [1, 1]} : vector<8x512xf32> to vector<8x128xf32>
    %113 = math.tanh %112 : vector<8x128xf32>
    %114 = arith.mulf %110, %97 : vector<8x128xf32>
    %115 = arith.mulf %109, %113 : vector<8x128xf32>
    %116 = arith.addf %114, %115 : vector<8x128xf32>
    %117 = math.tanh %116 : vector<8x128xf32>
    %118 = arith.mulf %111, %117 : vector<8x128xf32>
    %119 = vector.extract_strided_slice %21 {offsets = [40, 0], sizes = [8, 512], strides = [1, 1]} : vector<64x512xf32> to vector<8x512xf32>
    %cst_27 = arith.constant dense<0.000000e+00> : vector<8x512xf32>
    %120 = tpu.matmul %118, %42, %cst_27 {dimension_numbers = #tpu.dot_dimension_numbers<[1], [0], [0], [1], [0, 0, 1, 1], [], []>} : vector<8x128xf32>, vector<128x512xf32>, vector<8x512xf32> -> vector<8x512xf32>
    %121 = arith.addf %119, %120 : vector<8x512xf32>
    %122 = vector.extract_strided_slice %121 {offsets = [0, 0], sizes = [8, 384], strides = [1, 1]} : vector<8x512xf32> to vector<8x384xf32>
    %123 = arith.negf %122 : vector<8x384xf32>
    %124 = math.exp %123 : vector<8x384xf32>
    %cst_28 = arith.constant 1.000000e+00 : f32
    %125 = vector.broadcast %cst_28 : f32 to vector<8x384xf32>
    %126 = arith.addf %125, %124 : vector<8x384xf32>
    %127 = arith.divf %125, %126 : vector<8x384xf32>
    %128 = vector.extract_strided_slice %127 {offsets = [0, 0], sizes = [8, 128], strides = [1, 1]} : vector<8x384xf32> to vector<8x128xf32>
    %129 = vector.extract_strided_slice %127 {offsets = [0, 128], sizes = [8, 128], strides = [1, 1]} : vector<8x384xf32> to vector<8x128xf32>
    %130 = vector.extract_strided_slice %127 {offsets = [0, 256], sizes = [8, 128], strides = [1, 1]} : vector<8x384xf32> to vector<8x128xf32>
    %131 = vector.extract_strided_slice %121 {offsets = [0, 384], sizes = [8, 128], strides = [1, 1]} : vector<8x512xf32> to vector<8x128xf32>
    %132 = math.tanh %131 : vector<8x128xf32>
    %133 = arith.mulf %129, %116 : vector<8x128xf32>
    %134 = arith.mulf %128, %132 : vector<8x128xf32>
    %135 = arith.addf %133, %134 : vector<8x128xf32>
    %136 = math.tanh %135 : vector<8x128xf32>
    %137 = arith.mulf %130, %136 : vector<8x128xf32>
    %138 = vector.extract_strided_slice %21 {offsets = [48, 0], sizes = [8, 512], strides = [1, 1]} : vector<64x512xf32> to vector<8x512xf32>
    %cst_29 = arith.constant dense<0.000000e+00> : vector<8x512xf32>
    %139 = tpu.matmul %137, %42, %cst_29 {dimension_numbers = #tpu.dot_dimension_numbers<[1], [0], [0], [1], [0, 0, 1, 1], [], []>} : vector<8x128xf32>, vector<128x512xf32>, vector<8x512xf32> -> vector<8x512xf32>
    %140 = arith.addf %138, %139 : vector<8x512xf32>
    %141 = vector.extract_strided_slice %140 {offsets = [0, 0], sizes = [8, 384], strides = [1, 1]} : vector<8x512xf32> to vector<8x384xf32>
    %142 = arith.negf %141 : vector<8x384xf32>
    %143 = math.exp %142 : vector<8x384xf32>
    %cst_30 = arith.constant 1.000000e+00 : f32
    %144 = vector.broadcast %cst_30 : f32 to vector<8x384xf32>
    %145 = arith.addf %144, %143 : vector<8x384xf32>
    %146 = arith.divf %144, %145 : vector<8x384xf32>
    %147 = vector.extract_strided_slice %146 {offsets = [0, 0], sizes = [8, 128], strides = [1, 1]} : vector<8x384xf32> to vector<8x128xf32>
    %148 = vector.extract_strided_slice %146 {offsets = [0, 128], sizes = [8, 128], strides = [1, 1]} : vector<8x384xf32> to vector<8x128xf32>
    %149 = vector.extract_strided_slice %146 {offsets = [0, 256], sizes = [8, 128], strides = [1, 1]} : vector<8x384xf32> to vector<8x128xf32>
    %150 = vector.extract_strided_slice %140 {offsets = [0, 384], sizes = [8, 128], strides = [1, 1]} : vector<8x512xf32> to vector<8x128xf32>
    %151 = math.tanh %150 : vector<8x128xf32>
    %152 = arith.mulf %148, %135 : vector<8x128xf32>
    %153 = arith.mulf %147, %151 : vector<8x128xf32>
    %154 = arith.addf %152, %153 : vector<8x128xf32>
    %155 = math.tanh %154 : vector<8x128xf32>
    %156 = arith.mulf %149, %155 : vector<8x128xf32>
    %157 = vector.extract_strided_slice %21 {offsets = [56, 0], sizes = [8, 512], strides = [1, 1]} : vector<64x512xf32> to vector<8x512xf32>
    %cst_31 = arith.constant dense<0.000000e+00> : vector<8x512xf32>
    %158 = tpu.matmul %156, %42, %cst_31 {dimension_numbers = #tpu.dot_dimension_numbers<[1], [0], [0], [1], [0, 0, 1, 1], [], []>} : vector<8x128xf32>, vector<128x512xf32>, vector<8x512xf32> -> vector<8x512xf32>
    %159 = arith.addf %157, %158 : vector<8x512xf32>
    %160 = vector.extract_strided_slice %159 {offsets = [0, 0], sizes = [8, 384], strides = [1, 1]} : vector<8x512xf32> to vector<8x384xf32>
    %161 = arith.negf %160 : vector<8x384xf32>
    %162 = math.exp %161 : vector<8x384xf32>
    %cst_32 = arith.constant 1.000000e+00 : f32
    %163 = vector.broadcast %cst_32 : f32 to vector<8x384xf32>
    %164 = arith.addf %163, %162 : vector<8x384xf32>
    %165 = arith.divf %163, %164 : vector<8x384xf32>
    %166 = vector.extract_strided_slice %165 {offsets = [0, 0], sizes = [8, 128], strides = [1, 1]} : vector<8x384xf32> to vector<8x128xf32>
    %167 = vector.extract_strided_slice %165 {offsets = [0, 128], sizes = [8, 128], strides = [1, 1]} : vector<8x384xf32> to vector<8x128xf32>
    %168 = vector.extract_strided_slice %165 {offsets = [0, 256], sizes = [8, 128], strides = [1, 1]} : vector<8x384xf32> to vector<8x128xf32>
    %169 = vector.extract_strided_slice %159 {offsets = [0, 384], sizes = [8, 128], strides = [1, 1]} : vector<8x512xf32> to vector<8x128xf32>
    %170 = math.tanh %169 : vector<8x128xf32>
    %171 = arith.mulf %167, %154 : vector<8x128xf32>
    %172 = arith.mulf %166, %170 : vector<8x128xf32>
    %173 = arith.addf %171, %172 : vector<8x128xf32>
    %174 = math.tanh %173 : vector<8x128xf32>
    %175 = arith.mulf %168, %174 : vector<8x128xf32>
    %c1_i32_33 = arith.constant 1 : i32
    %176 = tpu.memref_slice %arg14[%c1_i32_33] : memref<3x!tpu.dma_semaphore, #tpu.memory_space<semaphore_mem>> -> memref<1x!tpu.dma_semaphore, #tpu.memory_space<semaphore_mem>>
    %177 = tpu.memref_squeeze %176 : memref<1x!tpu.dma_semaphore, #tpu.memory_space<semaphore_mem>> -> memref<!tpu.dma_semaphore, #tpu.memory_space<semaphore_mem>>
    tpu.wait_dma2 semaphore(%177 : memref<!tpu.dma_semaphore, #tpu.memory_space<semaphore_mem>>) src(%arg5 : memref<256x128xf32, #tpu.memory_space<any>>) dst(%arg12 : memref<256x128xf32, #tpu.memory_space<vmem>>)
    %c0_34 = arith.constant 0 : index
    %c0_35 = arith.constant 0 : index
    %178 = vector.load %arg12[%c0_34, %c0_35] : memref<256x128xf32, #tpu.memory_space<vmem>>, vector<128x128xf32>
    %cst_36 = arith.constant dense<0.000000e+00> : vector<8x128xf32>
    %179 = tpu.matmul %16, %178, %cst_36 {dimension_numbers = #tpu.dot_dimension_numbers<[1], [0], [0], [1], [0, 0, 1, 1], [], []>} : vector<8x128xf32>, vector<128x128xf32>, vector<8x128xf32> -> vector<8x128xf32>
    %c128_37 = arith.constant 128 : index
    %c0_38 = arith.constant 0 : index
    %180 = vector.load %arg12[%c128_37, %c0_38] : memref<256x128xf32, #tpu.memory_space<vmem>>, vector<128x128xf32>
    %cst_39 = arith.constant dense<0.000000e+00> : vector<8x128xf32>
    %181 = tpu.matmul %175, %180, %cst_39 {dimension_numbers = #tpu.dot_dimension_numbers<[1], [0], [0], [1], [0, 0, 1, 1], [], []>} : vector<8x128xf32>, vector<128x128xf32>, vector<8x128xf32> -> vector<8x128xf32>
    %182 = arith.addf %179, %181 : vector<8x128xf32>
    %183 = vector.broadcast %7 : vector<1x128xf32> to vector<8x128xf32>
    %184 = arith.addf %182, %183 : vector<8x128xf32>
    %cst_40 = arith.constant 0.000000e+00 : f32
    %185 = vector.broadcast %cst_40 : f32 to vector<8x128xf32>
    %186 = arith.maximumf %184, %185 : vector<8x128xf32>
    %c2_i32_41 = arith.constant 2 : i32
    %187 = tpu.memref_slice %arg14[%c2_i32_41] : memref<3x!tpu.dma_semaphore, #tpu.memory_space<semaphore_mem>> -> memref<1x!tpu.dma_semaphore, #tpu.memory_space<semaphore_mem>>
    %188 = tpu.memref_squeeze %187 : memref<1x!tpu.dma_semaphore, #tpu.memory_space<semaphore_mem>> -> memref<!tpu.dma_semaphore, #tpu.memory_space<semaphore_mem>>
    tpu.wait_dma2 semaphore(%188 : memref<!tpu.dma_semaphore, #tpu.memory_space<semaphore_mem>>) src(%arg6 : memref<128x128xf32, #tpu.memory_space<any>>) dst(%arg13 : memref<128x128xf32, #tpu.memory_space<vmem>>)
    %c0_42 = arith.constant 0 : index
    %c0_43 = arith.constant 0 : index
    %189 = vector.load %arg13[%c0_42, %c0_43] : memref<128x128xf32, #tpu.memory_space<vmem>>, vector<128x128xf32>
    %cst_44 = arith.constant dense<0.000000e+00> : vector<8x128xf32>
    %190 = tpu.matmul %186, %189, %cst_44 {dimension_numbers = #tpu.dot_dimension_numbers<[1], [0], [0], [1], [0, 0, 1, 1], [], []>} : vector<8x128xf32>, vector<128x128xf32>, vector<8x128xf32> -> vector<8x128xf32>
    %191 = vector.broadcast %8 : vector<1x128xf32> to vector<8x128xf32>
    %192 = arith.addf %190, %191 : vector<8x128xf32>
    %cst_45 = arith.constant 0.000000e+00 : f32
    %193 = vector.broadcast %cst_45 : f32 to vector<8x128xf32>
    %194 = arith.maximumf %192, %193 : vector<8x128xf32>
    %c0_46 = arith.constant 0 : index
    %c0_47 = arith.constant 0 : index
    %195 = vector.load %arg7[%c0_46, %c0_47] : memref<1x128xf32, #tpu.memory_space<vmem>>, vector<1x128xf32>
    %196 = vector.broadcast %195 : vector<1x128xf32> to vector<8x128xf32>
    %197 = arith.mulf %194, %196 : vector<8x128xf32>
    %cst_48 = arith.constant dense<0.000000e+00> : vector<8xf32>
    %198 = vector.multi_reduction <add>, %197, %cst_48 [1] : vector<8x128xf32> to vector<8xf32>
    %199 = vector.shape_cast %198 : vector<8xf32> to vector<8x1xf32>
    %c0_49 = arith.constant 0 : index
    %200 = memref.load %arg9[%c0_49] : memref<1xf32, #tpu.memory_space<smem>>
    %201 = vector.broadcast %200 : f32 to vector<8x1xf32>
    %202 = arith.addf %199, %201 : vector<8x1xf32>
    %c0_50 = arith.constant 0 : index
    %c0_51 = arith.constant 0 : index
    %203 = vector.load %arg10[%c0_50, %c0_51] : memref<8x1xf32, #tpu.memory_space<vmem>>, vector<8x1xf32>
    tpu.vector_store %arg10[%c0_50, %c0_51], %202 {strides = array<i32>} : memref<8x1xf32, #tpu.memory_space<vmem>>, vector<8x1xf32>,
    return
  }
}

</mosaic_0001>

<bundles_post_ra>
// kernel: custom-call
= control target key start
LH: loop header
LB: loop body
LE: loop exit
PB: predicated region body
PF: predicated region fallthrough
CT: control target
= control target key end

     0   :  { %s6_s0 = inlined_call_operand.vmem [shape: f32[896], index: 0, kind: output, shape index: {}]  }

// kernel: critic_forward.1
= control target key start
LH: loop header
LB: loop body
LE: loop exit
PB: predicated region body
PF: predicated region fallthrough
CT: control target
= control target key end

     0   :  { %s4616_s0 = inlined_call_operand.vmem [shape: f32[8,18], index: 0, kind: input, shape index: {}]   ;;  %s4617_s1 = inlined_call_operand.vmem [shape: f32[64,9], index: 1, kind: input, shape index: {}]   ;;  %s4618_s2 = inlined_call_operand.vmem [shape: f32[18,128], index: 2, kind: input, shape index: {}]   ;;  %s4619_s3 = inlined_call_operand.vmem [shape: f32[9,512], index: 3, kind: input, shape index: {}]   ;;  %s4620_s4 = inlined_call_operand.vmem [shape: f32[128,512], index: 4, kind: input, shape index: {}]   ;;  %s4621_s5 = inlined_call_operand.vmem [shape: f32[256,128], index: 5, kind: input, shape index: {}]   ;;  %s4622_s6 = inlined_call_operand.vmem [shape: f32[128,128], index: 6, kind: input, shape index: {}]   ;;  %s4623_s7 = inlined_call_operand.vmem [shape: f32[1,128], index: 7, kind: input, shape index: {}]   ;;  %s4624_s8 = inlined_call_operand.vmem [shape: f32[1,896], index: 8, kind: input, shape index: {}]   ;;  %s4625_s9 = inlined_call_operand.<no memory space> [shape: f32[1], index: 9, kind: input, shape index: {}]   ;;  %s4626_s10 = inlined_call_operand.vmem [shape: f32[8,1], index: 10, kind: output, shape index: {}]  }
   0x1   :  { %v3407_v0 = vld [vmem:[%s4620_s4] sm:$0xff]  ;;  %v3412_v1 = vld [vmem:[%s4620_s4 + $0x8] sm:$0xff]  ;;  %v3417_v2 = vld [vmem:[%s4620_s4 + $0x10] sm:$0xff] }
   0x2   :  { %v3422_v3 = vld [vmem:[%s4620_s4 + $0x18] sm:$0xff]  ;;  %v3427_v4 = vld [vmem:[%s4620_s4 + $0x20] sm:$0xff]  ;;  %v3432_v5 = vld [vmem:[%s4620_s4 + $0x28] sm:$0xff] }
   0x3   :  { %v3437_v6 = vld [vmem:[%s4620_s4 + $0x30] sm:$0xff]  ;;  %v3442_v7 = vld [vmem:[%s4620_s4 + $0x38] sm:$0xff]  ;;  %v3447_v8 = vld [vmem:[%s4620_s4 + $0x40] sm:$0xff] }
   0x4   :  { %v3452_v9 = vld [vmem:[%s4620_s4 + $0x48] sm:$0xff]  ;;  %v3457_v10 = vld [vmem:[%s4620_s4 + $0x50] sm:$0xff]  ;;  %v3462_v11 = vld [vmem:[%s4620_s4 + $0x58] sm:$0xff] }
   0x5   :  { %v3467_v12 = vld [vmem:[%s4620_s4 + $0x60] sm:$0xff]  ;;  %v3472_v13 = vld [vmem:[%s4620_s4 + $0x68] sm:$0xff]  ;;  %v3477_v14 = vld [vmem:[%s4620_s4 + $0x70] sm:$0xff] }
   0x6   :  { %v3482_v15 = vld [vmem:[%s4620_s4 + $0x78] sm:$0xff]  ;;  %v3487_v16 = vld [vmem:[%s4620_s4 + $0x80] sm:$0xff]  ;;  %v3492_v17 = vld [vmem:[%s4620_s4 + $0x88] sm:$0xff] }
   0x7   :  { %v3497_v18 = vld [vmem:[%s4620_s4 + $0x90] sm:$0xff]  ;;  %v3502_v19 = vld [vmem:[%s4620_s4 + $0x98] sm:$0xff]  ;;  %v3507_v20 = vld [vmem:[%s4620_s4 + $0xa0] sm:$0xff] }
   0x8   :  { %v3512_v21 = vld [vmem:[%s4620_s4 + $0xa8] sm:$0xff]  ;;  %v3517_v22 = vld [vmem:[%s4620_s4 + $0xb0] sm:$0xff]  ;;  %v3522_v23 = vld [vmem:[%s4620_s4 + $0xb8] sm:$0xff] }
   0x9   :  { %v3527_v24 = vld [vmem:[%s4620_s4 + $0xc0] sm:$0xff]  ;;  %v3532_v25 = vld [vmem:[%s4620_s4 + $0xc8] sm:$0xff]  ;;  %v3537_v26 = vld [vmem:[%s4620_s4 + $0xd0] sm:$0xff] }
   0xa   :  { %v3542_v27 = vld [vmem:[%s4620_s4 + $0xd8] sm:$0xff]  ;;  %v3547_v28 = vld [vmem:[%s4620_s4 + $0xe0] sm:$0xff]  ;;  %v3552_v29 = vld [vmem:[%s4620_s4 + $0xe8] sm:$0xff] }
   0xb   :  { %v3557_v30 = vld [vmem:[%s4620_s4 + $0xf0] sm:$0xff]  ;;  %v3562_v31 = vld [vmem:[%s4620_s4 + $0xf8] sm:$0xff]  ;;  %v3567_v32 = vld [vmem:[%s4620_s4 + $0x100] sm:$0xff] }
   0xc   :  { %v3572_v33 = vld [vmem:[%s4620_s4 + $0x108] sm:$0xff]  ;;  %v3577_v34 = vld [vmem:[%s4620_s4 + $0x110] sm:$0xff]  ;;  %v3582_v35 = vld [vmem:[%s4620_s4 + $0x118] sm:$0xff] }
   0xd   :  { %v3587_v36 = vld [vmem:[%s4620_s4 + $0x120] sm:$0xff]  ;;  %v3592_v37 = vld [vmem:[%s4620_s4 + $0x128] sm:$0xff]  ;;  %v3597_v38 = vld [vmem:[%s4620_s4 + $0x130] sm:$0xff] }
   0xe   :  { %v3602_v39 = vld [vmem:[%s4620_s4 + $0x138] sm:$0xff]  ;;  %v3607_v40 = vld [vmem:[%s4620_s4 + $0x140] sm:$0xff]  ;;  %v3612_v41 = vld [vmem:[%s4620_s4 + $0x148] sm:$0xff] }
   0xf   :  { %4635 = vst [vmem:[#allocation13_spill] sm:$0xff] %v3607_v40  ;;  %v3617_v42 = vld [vmem:[%s4620_s4 + $0x150] sm:$0xff]  ;;  %v3622_v43 = vld [vmem:[%s4620_s4 + $0x158] sm:$0xff]  ;;  %v3627_v44 = vld [vmem:[%s4620_s4 + $0x160] sm:$0xff] }
  0x10   :  { %4636 = vst [vmem:[#allocation14_spill] sm:$0xff] %v3617_v42  ;;  %4637 = vst [vmem:[#allocation15_spill] sm:$0xff] %v3627_v44  ;;  %v3632_v45 = vld [vmem:[%s4620_s4 + $0x168] sm:$0xff]  ;;  %v3637_v46 = vld [vmem:[%s4620_s4 + $0x170] sm:$0xff] }
  0x11   :  { %4638 = vst [vmem:[#allocation16_spill] sm:$0xff] %v3637_v46  ;;  %v3642_v47 = vld [vmem:[%s4620_s4 + $0x178] sm:$0xff]  ;;  %v3647_v48 = vld [vmem:[%s4620_s4 + $0x180] sm:$0xff]  ;;  %v3652_v49 = vld [vmem:[%s4620_s4 + $0x188] sm:$0xff] }
  0x12   :  { %4639 = vst [vmem:[#allocation17_spill] sm:$0xff] %v3647_v48  ;;  %4640 = vst [vmem:[#allocation18_spill] sm:$0xff] %v3652_v49  ;;  %v3657_v50 = vld [vmem:[%s4620_s4 + $0x190] sm:$0xff]  ;;  %v3662_v51 = vld [vmem:[%s4620_s4 + $0x198] sm:$0xff] }
  0x13   :  { %4641 = vst [vmem:[#allocation19_spill] sm:$0xff] %v3657_v50  ;;  %4642 = vst [vmem:[#allocation20_spill] sm:$0xff] %v3662_v51  ;;  %v3667_v52 = vld [vmem:[%s4620_s4 + $0x1a0] sm:$0xff]  ;;  %v3672_v53 = vld [vmem:[%s4620_s4 + $0x1a8] sm:$0xff] }
  0x14   :  { %4643 = vst [vmem:[#allocation21_spill] sm:$0xff] %v3667_v52  ;;  %4644 = vst [vmem:[#allocation22_spill] sm:$0xff] %v3672_v53  ;;  %v3677_v54 = vld [vmem:[%s4620_s4 + $0x1b0] sm:$0xff]  ;;  %v3682_v55 = vld [vmem:[%s4620_s4 + $0x1b8] sm:$0xff] }
  0x15   :  { %4645 = vst [vmem:[#allocation23_spill] sm:$0xff] %v3677_v54  ;;  %4646 = vst [vmem:[#allocation24_spill] sm:$0xff] %v3682_v55  ;;  %v3687_v56 = vld [vmem:[%s4620_s4 + $0x1c0] sm:$0xff]  ;;  %v3692_v57 = vld [vmem:[%s4620_s4 + $0x1c8] sm:$0xff] }
  0x16   :  { %4647 = vst [vmem:[#allocation25_spill] sm:$0xff] %v3687_v56  ;;  %4648 = vst [vmem:[#allocation26_spill] sm:$0xff] %v3692_v57  ;;  %v3697_v58 = vld [vmem:[%s4620_s4 + $0x1d0] sm:$0xff]  ;;  %v3702_v59 = vld [vmem:[%s4620_s4 + $0x1d8] sm:$0xff] }
  0x17   :  { %4649 = vst [vmem:[#allocation27_spill] sm:$0xff] %v3697_v58  ;;  %4650 = vst [vmem:[#allocation28_spill] sm:$0xff] %v3702_v59  ;;  %v3707_v60 = vld [vmem:[%s4620_s4 + $0x1e0] sm:$0xff]  ;;  %v3712_v61 = vld [vmem:[%s4620_s4 + $0x1e8] sm:$0xff] }
  0x18   :  { %4651 = vst [vmem:[#allocation29_spill] sm:$0xff] %v3707_v60  ;;  %4652 = vst [vmem:[#allocation30_spill] sm:$0xff] %v3712_v61  ;;  %v3717_v62 = vld [vmem:[%s4620_s4 + $0x1f0] sm:$0xff]  ;;  %v3722_v63 = vld [vmem:[%s4620_s4 + $0x1f8] sm:$0xff] }
  0x19   :  { %4653 = vst [vmem:[#allocation31_spill] sm:$0xff] %v3717_v62  ;;  %4654 = vst [vmem:[#allocation32_spill] sm:$0xff] %v3722_v63 }
  0x1a   :  { %197 = vsyncadd [#allocation5], 8192  ;;  %v3727_v58 = vld [vmem:[%s4621_s5] sm:$0xff]  ;;  %v3732_v60 = vld [vmem:[%s4621_s5 + $0x8] sm:$0xff] }
  0x1b   :  { %4655 = vst [vmem:[#allocation33_spill] sm:$0xff] %v3727_v58  ;;  %4656 = vst [vmem:[#allocation34_spill] sm:$0xff] %v3732_v60  ;;  %v3737_v62 = vld [vmem:[%s4621_s5 + $0x10] sm:$0xff]  ;;  %v3742_v56 = vld [vmem:[%s4621_s5 + $0x18] sm:$0xff] }
  0x1c   :  { %4657 = vst [vmem:[#allocation35_spill] sm:$0xff] %v3737_v62  ;;  %4658 = vst [vmem:[#allocation36_spill] sm:$0xff] %v3742_v56  ;;  %v3747_v63 = vld [vmem:[%s4621_s5 + $0x20] sm:$0xff]  ;;  %v3752_v58 = vld [vmem:[%s4621_s5 + $0x28] sm:$0xff] }
  0x1d   :  { %4659 = vst [vmem:[#allocation37_spill] sm:$0xff] %v3747_v63  ;;  %4660 = vst [vmem:[#allocation38_spill] sm:$0xff] %v3752_v58  ;;  %v3757_v60 = vld [vmem:[%s4621_s5 + $0x30] sm:$0xff]  ;;  %v3762_v62 = vld [vmem:[%s4621_s5 + $0x38] sm:$0xff] }
  0x1e   :  { %4661 = vst [vmem:[#allocation39_spill] sm:$0xff] %v3757_v60  ;;  %4662 = vst [vmem:[#allocation40_spill] sm:$0xff] %v3762_v62  ;;  %v3767_v56 = vld [vmem:[%s4621_s5 + $0x40] sm:$0xff]  ;;  %v3772_v63 = vld [vmem:[%s4621_s5 + $0x48] sm:$0xff] }
  0x1f   :  { %4663 = vst [vmem:[#allocation41_spill] sm:$0xff] %v3767_v56  ;;  %4664 = vst [vmem:[#allocation42_spill] sm:$0xff] %v3772_v63  ;;  %v3777_v58 = vld [vmem:[%s4621_s5 + $0x50] sm:$0xff]  ;;  %v3782_v60 = vld [vmem:[%s4621_s5 + $0x58] sm:$0xff] }
  0x20   :  { %4665 = vst [vmem:[#allocation43_spill] sm:$0xff] %v3777_v58  ;;  %4666 = vst [vmem:[#allocation44_spill] sm:$0xff] %v3782_v60  ;;  %v3787_v62 = vld [vmem:[%s4621_s5 + $0x60] sm:$0xff]  ;;  %v3792_v56 = vld [vmem:[%s4621_s5 + $0x68] sm:$0xff] }
  0x21   :  { %4667 = vst [vmem:[#allocation45_spill] sm:$0xff] %v3787_v62  ;;  %4668 = vst [vmem:[#allocation46_spill] sm:$0xff] %v3792_v56  ;;  %v3797_v63 = vld [vmem:[%s4621_s5 + $0x70] sm:$0xff]  ;;  %v3802_v58 = vld [vmem:[%s4621_s5 + $0x78] sm:$0xff] }
  0x22   :  { %4669 = vst [vmem:[#allocation47_spill] sm:$0xff] %v3797_v63  ;;  %4670 = vst [vmem:[#allocation48_spill] sm:$0xff] %v3802_v58  ;;  %v3807_v60 = vld [vmem:[%s4621_s5 + $0x80] sm:$0xff]  ;;  %v3812_v62 = vld [vmem:[%s4621_s5 + $0x88] sm:$0xff] }
  0x23   :  { %4671 = vst [vmem:[#allocation49_spill] sm:$0xff] %v3807_v60  ;;  %4672 = vst [vmem:[#allocation50_spill] sm:$0xff] %v3812_v62  ;;  %v3817_v56 = vld [vmem:[%s4621_s5 + $0x90] sm:$0xff]  ;;  %v3822_v63 = vld [vmem:[%s4621_s5 + $0x98] sm:$0xff] }
  0x24   :  { %4673 = vst [vmem:[#allocation51_spill] sm:$0xff] %v3817_v56  ;;  %4674 = vst [vmem:[#allocation52_spill] sm:$0xff] %v3822_v63  ;;  %v3827_v58 = vld [vmem:[%s4621_s5 + $0xa0] sm:$0xff]  ;;  %v3832_v60 = vld [vmem:[%s4621_s5 + $0xa8] sm:$0xff] }
  0x25   :  { %4675 = vst [vmem:[#allocation53_spill] sm:$0xff] %v3827_v58  ;;  %4676 = vst [vmem:[#allocation54_spill] sm:$0xff] %v3832_v60  ;;  %v3837_v62 = vld [vmem:[%s4621_s5 + $0xb0] sm:$0xff]  ;;  %v3842_v56 = vld [vmem:[%s4621_s5 + $0xb8] sm:$0xff] }
  0x26   :  { %4677 = vst [vmem:[#allocation55_spill] sm:$0xff] %v3837_v62  ;;  %4678 = vst [vmem:[#allocation56_spill] sm:$0xff] %v3842_v56  ;;  %v3847_v63 = vld [vmem:[%s4621_s5 + $0xc0] sm:$0xff]  ;;  %v3852_v58 = vld [vmem:[%s4621_s5 + $0xc8] sm:$0xff] }
  0x27   :  { %4679 = vst [vmem:[#allocation57_spill] sm:$0xff] %v3847_v63  ;;  %4680 = vst [vmem:[#allocation58_spill] sm:$0xff] %v3852_v58  ;;  %v3857_v60 = vld [vmem:[%s4621_s5 + $0xd0] sm:$0xff]  ;;  %v3862_v62 = vld [vmem:[%s4621_s5 + $0xd8] sm:$0xff] }
  0x28   :  { %4681 = vst [vmem:[#allocation59_spill] sm:$0xff] %v3857_v60  ;;  %4682 = vst [vmem:[#allocation60_spill] sm:$0xff] %v3862_v62  ;;  %v3867_v56 = vld [vmem:[%s4621_s5 + $0xe0] sm:$0xff]  ;;  %v3872_v63 = vld [vmem:[%s4621_s5 + $0xe8] sm:$0xff] }
  0x29   :  { %4683 = vst [vmem:[#allocation61_spill] sm:$0xff] %v3867_v56  ;;  %4684 = vst [vmem:[#allocation62_spill] sm:$0xff] %v3872_v63  ;;  %v3877_v58 = vld [vmem:[%s4621_s5 + $0xf0] sm:$0xff]  ;;  %v3882_v60 = vld [vmem:[%s4621_s5 + $0xf8] sm:$0xff] }
  0x2a   :  { %4685 = vst [vmem:[#allocation63_spill] sm:$0xff] %v3877_v58  ;;  %4686 = vst [vmem:[#allocation64_spill] sm:$0xff] %v3882_v60 }
  0x2b   :  { %302 = vsyncadd [#allocation5 + $0x1], 4096  ;;  %v3887_v56 = vld [vmem:[%s4622_s6] sm:$0xff]  ;;  %v3892_v63 = vld [vmem:[%s4622_s6 + $0x8] sm:$0xff]  ;;  %vm531_vm0 = vcmask 1040384   ;;  %vm3345_vm1 = vmmov 1  }
  0x2c   :  { %4687 = vst [vmem:[#allocation65_spill] sm:$0xff] %v3887_v56  ;;  %4688 = vst [vmem:[#allocation66_spill] sm:$0xff] %v3892_v63  ;;  %v3897_v58 = vld [vmem:[%s4622_s6 + $0x10] sm:$0xff]  ;;  %v3902_v60 = vld [vmem:[%s4622_s6 + $0x18] sm:$0xff]  ;;  %v4627_v50 = vmov 0.0  }
  0x2d   :  { %4689 = vst [vmem:[#allocation67_spill] sm:$0xff] %v3897_v58  ;;  %4690 = vst [vmem:[#allocation68_spill] sm:$0xff] %v3902_v60  ;;  %v3907_v62 = vld [vmem:[%s4622_s6 + $0x20] sm:$0xff]  ;;  %v3912_v56 = vld [vmem:[%s4622_s6 + $0x28] sm:$0xff]  ;;  %608 = vmatprep.mubr.f32.mxu1 %v4627_v50 }
  0x2e   :  { %4691 = vst [vmem:[#allocation69_spill] sm:$0xff] %v3907_v62  ;;  %4692 = vst [vmem:[#allocation70_spill] sm:$0xff] %v3912_v56  ;;  %v3917_v63 = vld [vmem:[%s4622_s6 + $0x30] sm:$0xff]  ;;  %v3922_v58 = vld [vmem:[%s4622_s6 + $0x38] sm:$0xff] }
  0x2f   :  { %4693 = vst [vmem:[#allocation71_spill] sm:$0xff] %v3917_v63  ;;  %4694 = vst [vmem:[#allocation72_spill] sm:$0xff] %v3922_v58  ;;  %v3927_v60 = vld [vmem:[%s4622_s6 + $0x40] sm:$0xff]  ;;  %v3932_v62 = vld [vmem:[%s4622_s6 + $0x48] sm:$0xff] }
  0x30   :  { %4695 = vst [vmem:[#allocation73_spill] sm:$0xff] %v3927_v60  ;;  %4696 = vst [vmem:[#allocation74_spill] sm:$0xff] %v3932_v62  ;;  %v3937_v56 = vld [vmem:[%s4622_s6 + $0x50] sm:$0xff]  ;;  %v3942_v63 = vld [vmem:[%s4622_s6 + $0x58] sm:$0xff] }
  0x31   :  { %4697 = vst [vmem:[#allocation75_spill] sm:$0xff] %v3937_v56  ;;  %4698 = vst [vmem:[#allocation76_spill] sm:$0xff] %v3942_v63  ;;  %v3947_v58 = vld [vmem:[%s4622_s6 + $0x60] sm:$0xff]  ;;  %v3952_v60 = vld [vmem:[%s4622_s6 + $0x68] sm:$0xff] }
  0x32   :  { %4699 = vst [vmem:[#allocation77_spill] sm:$0xff] %v3947_v58  ;;  %4700 = vst [vmem:[#allocation78_spill] sm:$0xff] %v3952_v60  ;;  %v3957_v62 = vld [vmem:[%s4622_s6 + $0x70] sm:$0xff]  ;;  %v3962_v56 = vld [vmem:[%s4622_s6 + $0x78] sm:$0xff] }
  0x33   :  { %4701 = vst [vmem:[#allocation79_spill] sm:$0xff] %v3957_v62  ;;  %4702 = vst [vmem:[#allocation80_spill] sm:$0xff] %v3962_v56  ;;  %v478_v63 = vld [vmem:[%s4619_s3 + $0x8] sm:$0xff]  ;;  %v477_v60 = vld [vmem:[%s4619_s3] sm:$0xff] }
  0x34   :  { %v482_v58 = vld [vmem:[%s4619_s3 + $0x28] sm:$0x1]  ;;  %vm3973_vm2 = vmpackc.low %vm531_vm0, %vm3345_vm1  ;;  %v481_v56 = vld [vmem:[%s4619_s3 + $0x20] sm:$0x1] }
  0x35   :  { %v2619_v59 = vpack.c.bf16 %v482_v58, %v478_v63  ;;  %v2622_v54 = vpack.c.bf16 %v481_v56, %v477_v60 }
  0x36   :  { %375 = vsyncadd [#allocation5 + $0x2], 2048  ;;  %v3984_v61 = vld [vmem:[%s4624_s8 + $0x1] ss:$0 sm:$0xff]  ;;  %v3989_v58 = vld [vmem:[%s4624_s8 + $0x2] ss:$0 sm:$0xff] }
  0x37   :  { %4705 = vst [vmem:[#allocation81_spill] sm:$0xff] %v3984_v61  ;;  %4706 = vst [vmem:[#allocation82_spill] sm:$0xff] %v3989_v58  ;;  %v4629_v63 = vmov 0.0|0.0   ;;  %2621 = vmatprep.subr.msk.bf16.mxu1 %vm3973_vm2, %v2619_v59  ;;  %v381_v56 = vld [vmem:[%s4618_s2] sm:$0xff]  ;;  %v382_v60 = vld [vmem:[%s4618_s2 + $0x8] sm:$0xff]  ;;  %vm506_vm3 = vcmask 72704  }
  0x38   :  { %2616 = vmatprep.subr.bf16.mxu0 %v4629_v63  ;;  %2624 = vmatpush1.bf16.msk.msra.mxu1 %vm3973_vm2, %v2622_v54  ;;  %v469_v50 = vld [vmem:[%s4617_s1] sm:$0xff]  ;;  %v2617_v63 = vpack.c.bf16 %v382_v60, %v381_v56  ;;  %vm3348_vm4 = vmmov 0   ;;  %v4707_v58 = vmov 0.0   ;;  %v480_v59 = vld [vmem:[%s4619_s3 + $0x18] sm:$0xff]  ;;  %v479_v54 = vld [vmem:[%s4619_s3 + $0x10] sm:$0xff]  ;;  %vm394_vm5 = vcmask 1041408  }
  0x39   :  { %2508 = vmatprep.mubr.msk.f32.mxu0 %vm3348_vm4, %v4707_v58  ;;  %v484_v61 = vld [vmem:[%s4619_s3 + $0x38] sm:$0x1]  ;;  %v483_v56 = vld [vmem:[%s4619_s3 + $0x30] sm:$0x1]  ;;  %v380_v52 = vld [vmem:[%s4616_s0] sm:$0xff]  ;;  %vm390_vm6 = vcmask 146432  }
  0x3a   :  { %2618 = vmatpush3.bf16.msra.mxu0 %v2617_v63  ;;  %v383_v60 = vld [vmem:[%s4618_s2 + $0x10] sm:$0x3]  ;;  %v2625_v57 = vpack.c.bf16 %v484_v61, %v480_v59  ;;  %v2628_v48 = vpack.c.bf16 %v483_v56, %v479_v54  ;;  %v470_v61 = vld [vmem:[%s4617_s1 + $0x8] sm:$0xff]  ;;  %v476_v63 = vld [vmem:[%s4617_s1 + $0x38] sm:$0xff]  ;;  %v486_v59 = vlaneseq }
  0x3b   :  { %2399 = vmatmul.mubr.msk.f32.vlgmr.msra.gmra.mrb[0].mxu1 %vm506_vm3, %v469_v50  ;;  %2506 = vmatprep.subr.mxu0 %v4707_v58  ;;  %v475_v62 = vld [vmem:[%s4617_s1 + $0x30] sm:$0xff] }
  0x3c   :  { %614 = vmatprep.mubr.f32.mxu1 %v4707_v58  ;;  %v487_v54 = vshrl.u32 %v486_v59, 7 }
  0x3e   :  { %2507 = vmatpush3.msk.msra.mxu0 %vm394_vm5, %v383_v60  ;;  %v488_v56 = vsub.s32 0, %v487_v54  ;;  %v379_v60 = vld [vmem:[%s4624_s8 + $0x3] sm:$0xf]  ;;  %v496_v55 = vsub.s32 2, %v487_v54  ;;  %v500_v53 = vsub.s32 3, %v487_v54 }
  0x3f   :  { %2509 = vmatmul.mubr.msk.f32.vlgmr.msra.gmra.mrb[0].mxu0 %vm390_vm6, %v380_v52  ;;  %2627 = vmatprep.subr.msk.bf16.mxu0 %vm3973_vm2, %v2625_v57  ;;  %v473_v52 = vld [vmem:[%s4617_s1 + $0x20] sm:$0xff]  ;;  %v474_v57 = vld [vmem:[%s4617_s1 + $0x28] sm:$0xff] }
  0x40   :  { %2630 = vmatpush1.bf16.msk.msra.mxu0 %vm3973_vm2, %v2628_v48  ;;  %721 = vmatprep.mubr.f32.mxu0 %v4707_v58  ;;  %v471_v48 = vld [vmem:[%s4617_s1 + $0x10] sm:$0xff]  ;;  %v4096_v49 = vrot.slane %v379_v60, %v496_v55  ;;  %v4099_v44 = vrot.slane %v379_v60, %v500_v53 }
  0x41   :  { %2400 = vmatmul.mubr.msk.f32.gmra.mrb[2].mxu1 %vm506_vm3, %v470_v61 }
  0x42   :  { %620 = vmatprep.mubr.f32.mxu1 %v4707_v58 }
  0x43   :  { %2409 = vmatmul.mubr.msk.f32.vlgmr.msra.gmra.mrb[2].mxu0 %vm506_vm3, %v469_v50  ;;  %v472_v50 = vld [vmem:[%s4617_s1 + $0x18] sm:$0xff] }
  0x44   :  { %727 = vmatprep.mubr.f32.mxu0 %v4707_v58 }
  0x45   :  { %2401 = vmatmul.mubr.msk.f32.gmra.mrb[4].mxu1 %vm506_vm3, %v471_v48 }
  0x46   :  { %626 = vmatprep.mubr.f32.mxu1 %v4707_v58 }
  0x47   :  { %2410 = vmatmul.mubr.msk.f32.gmra.mrb[4].mxu0 %vm506_vm3, %v470_v61  ;;  %v492_v61 = vsub.s32 1, %v487_v54 }
  0x48   :  { %733 = vmatprep.mubr.f32.mxu0 %v4707_v58 }
  0x49   :  { %2402 = vmatmul.mubr.msk.f32.gmra.mrb[6].mxu1 %vm506_vm3, %v472_v50 }
  0x4a   :  { %632 = vmatprep.mubr.f32.mxu1 %v4707_v58 }
  0x4b   :  { %2411 = vmatmul.mubr.msk.f32.gmra.mrb[6].mxu0 %vm506_vm3, %v471_v48  ;;  %v4085_v48 = vrot.slane %v379_v60, %v488_v56 }
  0x4c   :  { %739 = vmatprep.mubr.f32.mxu0 %v4707_v58 }
  0x4d   :  { %2403 = vmatmul.mubr.msk.f32.gmra.mrb[8].mxu1 %vm506_vm3, %v473_v52  ;;  %4708 = vst [vmem:[#allocation83_spill] sm:$0xff] %v4085_v48 }
  0x4e   :  { %638 = vmatprep.mubr.f32.mxu1 %v4707_v58 }
  0x4f   :  { %2412 = vmatmul.mubr.msk.f32.gmra.mrb[8].mxu0 %vm506_vm3, %v472_v50  ;;  %v4087_v50 = vrot.slane %v379_v60, %v492_v61 }
  0x50   :  { %745 = vmatprep.mubr.f32.mxu0 %v4707_v58 }
  0x51   :  { %2404 = vmatmul.mubr.msk.f32.gmra.mrb[10].mxu1 %vm506_vm3, %v474_v57  ;;  %4709 = vst [vmem:[#allocation84_spill] sm:$0xff] %v4087_v50 }
  0x52   :  { %644 = vmatprep.mubr.f32.mxu1 %v4707_v58 }
  0x53   :  { %2413 = vmatmul.mubr.msk.f32.gmra.mrb[10].mxu0 %vm506_vm3, %v473_v52 }
  0x54   :  { %751 = vmatprep.mubr.f32.mxu0 %v4707_v58 }
  0x55   :  { %2405 = vmatmul.mubr.msk.f32.gmra.mrb[12].mxu1 %vm506_vm3, %v475_v62 }
  0x56   :  { %650 = vmatprep.mubr.f32.mxu1 %v4707_v58 }
  0x57   :  { %2414 = vmatmul.mubr.msk.f32.gmra.mrb[12].mxu0 %vm506_vm3, %v474_v57 }
  0x58   :  { %757 = vmatprep.mubr.f32.mxu0 %v4707_v58 }
  0x59   :  { %2406 = vmatmul.mubr.msk.f32.gmra.mrb[14].mxu1 %vm506_vm3, %v476_v63 }
  0x5a   :  { %926 = vmatprep.mubr.f32.mxu1 %v4707_v58 }
  0x5b   :  { %2415 = vmatmul.mubr.msk.f32.gmra.mrb[14].mxu0 %vm506_vm3, %v475_v62 }
  0x5c   :  { %763 = vmatprep.mubr.f32.mxu0 %v4707_v58 }
  0x5f   :  { %2416 = vmatmul.mubr.msk.f32.gmra.mrb[16].mxu0 %vm506_vm3, %v476_v63  ;;  %v2394_v63 = vld [vmem:[%s4624_s8] ss:$0 sm:$0xff] }
 0x10e   :  { %v610_v52 = vpop.f32.mrb[0].mxu1 }
 0x10f   :  { %v611_v57 = vadd.f32 %v610_v52, %v4085_v48  ;;  %v612_v62 = vpop.f32.mrb[1].mxu1 }
 0x110   :  { %v613_v51 = vadd.f32 %v612_v62, %v4087_v50 }
 0x111   :  { %v2417_v59 = vmul.f32 -1.442695, %v611_v57 }
 0x112   :  { %v2418_v46 = vmul.f32 -1.442695, %v613_v51  ;;  %v464_v42 = vpop.f32.mrb[0].mxu0 }
 0x113   :  { %3211 = vpow2.f32 %v2417_v59  ;;  %v4094_v56 = vadd.f32 %v2394_v63, %v464_v42  ;;  %v2510_v61 = vpop.f32.mrb[1].mxu0 }
 0x114   :  { %3213 = vpow2.f32 %v2418_v46 }
 0x116   :  { %v723_v48 = vpop.f32.mrb[2].mxu0 }
 0x117   :  { %v724_v62 = vadd.f32 %v723_v48, %v4096_v49  ;;  %v725_v50 = vpop.f32.mrb[3].mxu0 }
 0x118   :  { %v726_v51 = vadd.f32 %v725_v50, %v4099_v44 }
 0x119   :  { %v2419_v40 = vmul.f32 -1.442695, %v724_v62 }
 0x11b   :  { %3215 = vpow2.f32 %v2419_v40 }
 0x11c   :  { %3217 = vtanh.f32 %v726_v51  ;;  %v4110_v51 = vpack.c.bf16 %v3432_v5, %v3412_v1 }
 0x11d   :  { %v3212_v57 = vpop.eup %3211 }
 0x11e   :  { %v3214_v54 = vpop.eup %3213  ;;  %v779_v42 = vadd.f32 1.0, %v3212_v57  ;;  %v4114_v57 = vpack.c.bf16 %v3427_v4, %v3407_v0 }
 0x11f   :  { %v780_v63 = vadd.f32 1.0, %v3214_v54  ;;  %v4118_v54 = vpack.c.bf16 %v3472_v13, %v3452_v9 }
 0x120   :  { %3219 = vrcp.f32 %v779_v42 }
 0x121   :  { %3221 = vrcp.f32 %v780_v63 }
 0x125   :  { %v3216_v46 = vpop.eup %3215 }
 0x126   :  { %v3218_v55 = vpop.eup %3217  ;;  %v781_v61 = vadd.f32 1.0, %v3216_v46 }
 0x128   :  { %3223 = vrcp.f32 %v781_v61 }
 0x12a   :  { %v3220_v59 = vpop.eup %3219 }
 0x12b   :  { %v3222_v53 = vpop.eup %3221  ;;  %v790_v60 = vmul.f32 %v3220_v59, %v3218_v55 }
 0x12c   :  { %v789_v52 = vmul.f32 0.0, %v3222_v53 }
 0x12e   :  { %v4103_v48 = vadd.f32 %v790_v60, %v789_v52 }
 0x130   :  { %3225 = vtanh.f32 %v4103_v48 }
 0x132   :  { %v3224_v50 = vpop.eup %3223 }
 0x13a   :  { %v3226_v40 = vpop.eup %3225 }
 0x13b   :  { %v4106_v62 = vmul.f32 %v3226_v40, %v3224_v50 }
 0x13c   :  { %3339 = dma.done.wait [#allocation5], 8192 }
 0x13d   :  { %3340 = vsyncadd [#allocation5], 4294959104  ;;  %997 = vmatprep.mubr.f32.mxu0 %v4707_v58  ;;  %2632 = vmatprep.subr.bf16.mxu1 %v4110_v51  ;;  %v4125_v1 = vpack.c.bf16 %v3442_v7, %v3422_v3  ;;  %v4129_v0 = vpack.c.bf16 %v3437_v6, %v3417_v2  ;;  %v4134_v4 = vpack.c.bf16 %v3467_v12, %v3447_v8  ;;  %v4727_v52 = vld [vmem:[#allocation29_spill] sm:$0xff]  ;;  %v4728_v63 = vld [vmem:[#allocation27_spill] sm:$0xff] }
 0x13e   :  { %2634 = vmatpush1.bf16.msra.mxu1 %v4114_v57  ;;  %v4138_v5 = vpack.c.bf16 %v3482_v15, %v3462_v11  ;;  %v4143_v3 = vpack.c.bf16 %v3512_v21, %v3492_v17  ;;  %v4149_v2 = vpack.c.bf16 %v3477_v14, %v3457_v10  ;;  %v4154_v6 = vpack.c.bf16 %v3522_v23, %v3502_v19  ;;  %v4710_v19 = vld [vmem:[#allocation13_spill] sm:$0xff]  ;;  %v4713_v23 = vld [vmem:[#allocation22_spill] sm:$0xff]  ;;  %v4729_v46 = vld [vmem:[#allocation31_spill] sm:$0xff] }
 0x13f   :  { %2636 = vmatprep.subr.bf16.mxu1 %v4118_v54  ;;  %2664 = vmatprep.subr.bf16.mxu0 %v4125_v1  ;;  %v4159_v7 = vpack.c.bf16 %v3507_v20, %v3487_v16  ;;  %v4164_v8 = vpack.c.bf16 %v3552_v29, %v3532_v25  ;;  %v4169_v9 = vpack.c.bf16 %v3517_v22, %v3497_v18  ;;  %v4711_v20 = vld [vmem:[#allocation15_spill] sm:$0xff]  ;;  %v4712_v22 = vld [vmem:[#allocation18_spill] sm:$0xff]  ;;  %v4717_v29 = vld [vmem:[#allocation24_spill] sm:$0xff] }
 0x140   :  { %2666 = vmatpush1.bf16.msra.mxu0 %v4129_v0  ;;  %v4174_v10 = vpack.c.bf16 %v3562_v31, %v3542_v27  ;;  %v4179_v11 = vpack.c.bf16 %v3547_v28, %v3527_v24  ;;  %v4184_v12 = vpack.c.bf16 %v3592_v37, %v3572_v33  ;;  %v4189_v13 = vpack.c.bf16 %v3557_v30, %v3537_v26  ;;  %v4714_v25 = vld [vmem:[#allocation14_spill] sm:$0xff]  ;;  %v4715_v26 = vld [vmem:[#allocation16_spill] sm:$0xff]  ;;  %v4718_v31 = vld [vmem:[#allocation17_spill] sm:$0xff] }
 0x141   :  { %2668 = vmatprep.subr.bf16.mxu0 %v4138_v5  ;;  %v4194_v14 = vpack.c.bf16 %v3602_v39, %v3582_v35  ;;  %v4199_v15 = vpack.c.bf16 %v3587_v36, %v3567_v32  ;;  %v4204_v16 = vpack.c.bf16 %v3632_v45, %v3612_v41  ;;  %v4209_v17 = vpack.c.bf16 %v3597_v38, %v3577_v34  ;;  %v4716_v28 = vld [vmem:[#allocation20_spill] sm:$0xff]  ;;  %v4719_v32 = vld [vmem:[#allocation21_spill] sm:$0xff]  ;;  %v4720_v34 = vld [vmem:[#allocation26_spill] sm:$0xff] }
 0x142   :  { %2638 = vmatpush1.bf16.msra.mxu1 %v4134_v4  ;;  %v4214_v18 = vpack.c.bf16 %v3642_v47, %v3622_v43  ;;  %v4219_v21 = vpack.c.bf16 %v4711_v20, %v4710_v19  ;;  %v4224_v24 = vpack.c.bf16 %v4713_v23, %v4712_v22  ;;  %v4229_v27 = vpack.c.bf16 %v4715_v26, %v4714_v25  ;;  %v4721_v35 = vld [vmem:[#allocation30_spill] sm:$0xff]  ;;  %v4722_v37 = vld [vmem:[#allocation19_spill] sm:$0xff]  ;;  %v4724_v41 = vld [vmem:[#allocation28_spill] sm:$0xff] }
 0x143   :  { %2640 = vmatprep.subr.bf16.mxu1 %v4143_v3  ;;  %v4234_v30 = vpack.c.bf16 %v4717_v29, %v4716_v28  ;;  %v4239_v33 = vpack.c.bf16 %v4719_v32, %v4718_v31  ;;  %v4244_v36 = vpack.c.bf16 %v4721_v35, %v4720_v34  ;;  %v4723_v38 = vld [vmem:[#allocation23_spill] sm:$0xff]  ;;  %v4725_v43 = vld [vmem:[#allocation32_spill] sm:$0xff]  ;;  %v4726_v47 = vld [vmem:[#allocation25_spill] sm:$0xff]  ;;  %v4265_v55 = vpack.c.bf16 %v4729_v46, %v4728_v63 }
 0x144   :  { %2670 = vmatpush1.bf16.msra.mxu0 %v4149_v2  ;;  %v4249_v39 = vpack.c.bf16 %v4723_v38, %v4722_v37  ;;  %v4254_v45 = vpack.c.bf16 %v4725_v43, %v4724_v41  ;;  %v4259_v42 = vpack.c.bf16 %v4727_v52, %v4726_v47  ;;  %v4730_v61 = vld [vmem:[#allocation83_spill] sm:$0xff]  ;;  %v4731_v50 = vld [vmem:[#allocation84_spill] sm:$0xff] }
 0x145   :  { %2672 = vmatprep.subr.bf16.mxu0 %v4154_v6 }
 0x146   :  { %2642 = vmatpush1.bf16.msra.mxu1 %v4159_v7 }
 0x147   :  { %2644 = vmatprep.subr.bf16.mxu1 %v4164_v8 }
 0x148   :  { %2674 = vmatpush1.bf16.msra.mxu0 %v4169_v9 }
 0x149   :  { %2676 = vmatprep.subr.bf16.mxu0 %v4174_v10 }
 0x14a   :  { %2646 = vmatpush1.bf16.msra.mxu1 %v4179_v11 }
 0x14b   :  { %2648 = vmatprep.subr.bf16.mxu1 %v4184_v12 }
 0x14c   :  { %2678 = vmatpush1.bf16.msra.mxu0 %v4189_v13 }
 0x14d   :  { %2680 = vmatprep.subr.bf16.mxu0 %v4194_v14 }
 0x14e   :  { %2650 = vmatpush1.bf16.msra.mxu1 %v4199_v15 }
 0x14f   :  { %2652 = vmatprep.subr.bf16.mxu1 %v4204_v16 }
 0x150   :  { %2682 = vmatpush1.bf16.msra.mxu0 %v4209_v17 }
 0x151   :  { %2684 = vmatprep.subr.bf16.mxu0 %v4214_v18 }
 0x152   :  { %2654 = vmatpush1.bf16.msra.mxu1 %v4219_v21 }
 0x153   :  { %2656 = vmatprep.subr.bf16.mxu1 %v4224_v24 }
 0x154   :  { %2686 = vmatpush1.bf16.msra.mxu0 %v4229_v27 }
 0x155   :  { %2688 = vmatprep.subr.bf16.mxu0 %v4234_v30 }
 0x156   :  { %2658 = vmatpush1.bf16.msra.mxu1 %v4239_v33 }
 0x157   :  { %2660 = vmatprep.subr.bf16.mxu1 %v4244_v36 }
 0x158   :  { %2690 = vmatpush1.bf16.msra.mxu0 %v4249_v39 }
 0x159   :  { %2692 = vmatprep.subr.bf16.mxu0 %v4254_v45 }
 0x15a   :  { %2662 = vmatpush1.bf16.msra.mxu1 %v4259_v42 }
 0x15b   :  { %2696 = vmatprep.subr.bf16.mxu1 %v4110_v51 }
 0x15c   :  { %2694 = vmatpush1.bf16.msra.mxu0 %v4265_v55 }
 0x15d   :  { %927 = vmatmul.mubr.f32.vlgmr.msra.gmra.mrb[2].mxu1 %v4106_v62  ;;  %2728 = vmatprep.subr.bf16.mxu0 %v4125_v1 }
 0x15e   :  { %2698 = vmatpush1.bf16.msra.mxu1 %v4114_v57  ;;  %1096 = vmatprep.mubr.f32.mxu1 %v4707_v58 }
 0x15f   :  { %998 = vmatmul.mubr.f32.vlgmr.msra.gmra.mrb[4].mxu0 %v4106_v62  ;;  %2700 = vmatprep.subr.bf16.mxu1 %v4118_v54 }
 0x160   :  { %2730 = vmatpush1.bf16.msra.mxu0 %v4129_v0  ;;  %1167 = vmatprep.mubr.f32.mxu0 %v4707_v58 }
 0x161   :  { %2732 = vmatprep.subr.bf16.mxu0 %v4138_v5 }
 0x162   :  { %2702 = vmatpush1.bf16.msra.mxu1 %v4134_v4 }
 0x163   :  { %2704 = vmatprep.subr.bf16.mxu1 %v4143_v3 }
 0x164   :  { %2734 = vmatpush1.bf16.msra.mxu0 %v4149_v2 }
 0x165   :  { %2736 = vmatprep.subr.bf16.mxu0 %v4154_v6 }
 0x166   :  { %2706 = vmatpush1.bf16.msra.mxu1 %v4159_v7 }
 0x167   :  { %2708 = vmatprep.subr.bf16.mxu1 %v4164_v8 }
 0x168   :  { %2738 = vmatpush1.bf16.msra.mxu0 %v4169_v9 }
 0x169   :  { %2740 = vmatprep.subr.bf16.mxu0 %v4174_v10 }
 0x16a   :  { %2710 = vmatpush1.bf16.msra.mxu1 %v4179_v11 }
 0x16b   :  { %2712 = vmatprep.subr.bf16.mxu1 %v4184_v12 }
 0x16c   :  { %2742 = vmatpush1.bf16.msra.mxu0 %v4189_v13 }
 0x16d   :  { %2744 = vmatprep.subr.bf16.mxu0 %v4194_v14 }
 0x16e   :  { %2714 = vmatpush1.bf16.msra.mxu1 %v4199_v15 }
 0x16f   :  { %2716 = vmatprep.subr.bf16.mxu1 %v4204_v16 }
 0x170   :  { %2746 = vmatpush1.bf16.msra.mxu0 %v4209_v17 }
 0x171   :  { %2748 = vmatprep.subr.bf16.mxu0 %v4214_v18 }
 0x172   :  { %2718 = vmatpush1.bf16.msra.mxu1 %v4219_v21 }
 0x173   :  { %2720 = vmatprep.subr.bf16.mxu1 %v4224_v24 }
 0x174   :  { %2750 = vmatpush1.bf16.msra.mxu0 %v4229_v27 }
 0x175   :  { %2752 = vmatprep.subr.bf16.mxu0 %v4234_v30 }
 0x176   :  { %2722 = vmatpush1.bf16.msra.mxu1 %v4239_v33 }
 0x177   :  { %2724 = vmatprep.subr.bf16.mxu1 %v4244_v36 }
 0x178   :  { %2754 = vmatpush1.bf16.msra.mxu0 %v4249_v39 }
 0x179   :  { %2756 = vmatprep.subr.bf16.mxu0 %v4254_v45 }
 0x17a   :  { %2726 = vmatpush1.bf16.msra.mxu1 %v4259_v42 }
 0x17b   :  { %2760 = vmatprep.subr.bf16.mxu1 %v4110_v51 }
 0x17c   :  { %2758 = vmatpush1.bf16.msra.mxu0 %v4265_v55 }
 0x17d   :  { %2792 = vmatprep.subr.bf16.mxu0 %v4125_v1 }
 0x230   :  { %v928_v59 = vpop.f32.mrb[2].mxu1 }
 0x231   :  { %v3151_v53 = vadd.f32 %v928_v59, %v4730_v61  ;;  %v930_v60 = vpop.f32.mrb[3].mxu1 }
 0x232   :  { %v3152_v40 = vadd.f32 %v930_v60, %v4731_v50  ;;  %v999_v62 = vpop.f32.mrb[4].mxu0 }
 0x233   :  { %v2420_v19 = vmul.f32 -1.442695, %v3151_v53  ;;  %v1001_v20 = vpop.f32.mrb[5].mxu0  ;;  %v3165_v23 = vadd.f32 %v999_v62, %v4096_v49 }
 0x234   :  { %v2421_v22 = vmul.f32 -1.442695, %v3152_v40  ;;  %v3166_v26 = vadd.f32 %v1001_v20, %v4099_v44 }
 0x235   :  { %3227 = vpow2.f32 %v2420_v19  ;;  %v2422_v25 = vmul.f32 -1.442695, %v3165_v23 }
 0x236   :  { %3229 = vpow2.f32 %v2421_v22 }
 0x237   :  { %3231 = vpow2.f32 %v2422_v25 }
 0x238   :  { %3233 = vtanh.f32 %v3166_v26 }
 0x23f   :  { %v3228_v28 = vpop.eup %3227 }
 0x240   :  { %v3230_v29 = vpop.eup %3229  ;;  %v1017_v31 = vadd.f32 1.0, %v3228_v28 }
 0x241   :  { %v1018_v32 = vadd.f32 1.0, %v3230_v29  ;;  %v3232_v34 = vpop.eup %3231 }
 0x242   :  { %3235 = vrcp.f32 %v1017_v31  ;;  %v3234_v35 = vpop.eup %3233  ;;  %v1019_v38 = vadd.f32 1.0, %v3232_v34 }
 0x243   :  { %3237 = vrcp.f32 %v1018_v32 }
 0x244   :  { %3239 = vrcp.f32 %v1019_v38 }
 0x24c   :  { %v3236_v37 = vpop.eup %3235 }
 0x24d   :  { %v3238_v41 = vpop.eup %3237  ;;  %v1028_v43 = vmul.f32 %v3236_v37, %v3234_v35 }
 0x24e   :  { %v1027_v47 = vmul.f32 %v3238_v41, %v4103_v48  ;;  %v3240_v63 = vpop.eup %3239 }
 0x250   :  { %v4313_v52 = vadd.f32 %v1028_v43, %v1027_v47 }
 0x252   :  { %3241 = vtanh.f32 %v4313_v52 }
 0x25c   :  { %v3242_v46 = vpop.eup %3241 }
 0x25d   :  { %v1031_v59 = vmul.f32 %v3242_v46, %v3240_v63 }
 0x25f   :  { %1097 = vmatmul.mubr.f32.vlgmr.msra.gmra.mrb[4].mxu1 %v1031_v59  ;;  %1168 = vmatmul.mubr.f32.vlgmr.msra.gmra.mrb[6].mxu0 %v1031_v59 }
 0x260   :  { %2762 = vmatpush1.bf16.msra.mxu1 %v4114_v57  ;;  %2794 = vmatpush1.bf16.msra.mxu0 %v4129_v0 }
 0x261   :  { %2764 = vmatprep.subr.bf16.mxu1 %v4118_v54  ;;  %2796 = vmatprep.subr.bf16.mxu0 %v4138_v5 }
 0x262   :  { %1266 = vmatprep.mubr.f32.mxu1 %v4707_v58  ;;  %1337 = vmatprep.mubr.f32.mxu0 %v4707_v58 }
 0x264   :  { %2766 = vmatpush1.bf16.msra.mxu1 %v4134_v4  ;;  %2798 = vmatpush1.bf16.msra.mxu0 %v4149_v2 }
 0x265   :  { %2768 = vmatprep.subr.bf16.mxu1 %v4143_v3  ;;  %2800 = vmatprep.subr.bf16.mxu0 %v4154_v6 }
 0x268   :  { %2770 = vmatpush1.bf16.msra.mxu1 %v4159_v7  ;;  %2802 = vmatpush1.bf16.msra.mxu0 %v4169_v9 }
 0x269   :  { %2772 = vmatprep.subr.bf16.mxu1 %v4164_v8  ;;  %2804 = vmatprep.subr.bf16.mxu0 %v4174_v10 }
 0x26c   :  { %2774 = vmatpush1.bf16.msra.mxu1 %v4179_v11  ;;  %2806 = vmatpush1.bf16.msra.mxu0 %v4189_v13 }
 0x26d   :  { %2776 = vmatprep.subr.bf16.mxu1 %v4184_v12  ;;  %2808 = vmatprep.subr.bf16.mxu0 %v4194_v14 }
 0x270   :  { %2778 = vmatpush1.bf16.msra.mxu1 %v4199_v15  ;;  %2810 = vmatpush1.bf16.msra.mxu0 %v4209_v17 }
 0x271   :  { %2780 = vmatprep.subr.bf16.mxu1 %v4204_v16  ;;  %2812 = vmatprep.subr.bf16.mxu0 %v4214_v18 }
 0x274   :  { %2782 = vmatpush1.bf16.msra.mxu1 %v4219_v21  ;;  %2814 = vmatpush1.bf16.msra.mxu0 %v4229_v27 }
 0x275   :  { %2784 = vmatprep.subr.bf16.mxu1 %v4224_v24  ;;  %2816 = vmatprep.subr.bf16.mxu0 %v4234_v30 }
 0x278   :  { %2786 = vmatpush1.bf16.msra.mxu1 %v4239_v33  ;;  %2818 = vmatpush1.bf16.msra.mxu0 %v4249_v39 }
 0x279   :  { %2788 = vmatprep.subr.bf16.mxu1 %v4244_v36  ;;  %2820 = vmatprep.subr.bf16.mxu0 %v4254_v45 }
 0x27c   :  { %2790 = vmatpush1.bf16.msra.mxu1 %v4259_v42  ;;  %2822 = vmatpush1.bf16.msra.mxu0 %v4265_v55 }
 0x27d   :  { %2824 = vmatprep.subr.bf16.mxu1 %v4110_v51  ;;  %2856 = vmatprep.subr.bf16.mxu0 %v4125_v1 }
 0x332   :  { %v1098_v48 = vpop.f32.mrb[4].mxu1  ;;  %v1169_v53 = vpop.f32.mrb[6].mxu0 }
 0x333   :  { %v3153_v60 = vadd.f32 %v1098_v48, %v4730_v61  ;;  %v1100_v40 = vpop.f32.mrb[5].mxu1  ;;  %v1171_v62 = vpop.f32.mrb[7].mxu0  ;;  %v3167_v23 = vadd.f32 %v1169_v53, %v4096_v49 }
 0x334   :  { %v3154_v19 = vadd.f32 %v1100_v40, %v4731_v50  ;;  %v3168_v25 = vadd.f32 %v1171_v62, %v4099_v44 }
 0x335   :  { %v2423_v20 = vmul.f32 -1.442695, %v3153_v60  ;;  %v2425_v26 = vmul.f32 -1.442695, %v3167_v23 }
 0x336   :  { %v2424_v22 = vmul.f32 -1.442695, %v3154_v19 }
 0x337   :  { %3243 = vpow2.f32 %v2423_v20 }
 0x338   :  { %3245 = vpow2.f32 %v2424_v22 }
 0x339   :  { %3247 = vtanh.f32 %v3168_v25 }
 0x33a   :  { %3249 = vpow2.f32 %v2425_v26 }
 0x341   :  { %v3244_v28 = vpop.eup %3243 }
 0x342   :  { %v1187_v29 = vadd.f32 1.0, %v3244_v28  ;;  %v3246_v31 = vpop.eup %3245 }
 0x343   :  { %v1188_v32 = vadd.f32 1.0, %v3246_v31  ;;  %v3248_v34 = vpop.eup %3247 }
 0x344   :  { %3251 = vrcp.f32 %v1187_v29  ;;  %v3250_v35 = vpop.eup %3249 }
 0x345   :  { %3253 = vrcp.f32 %v1188_v32  ;;  %v1189_v43 = vadd.f32 1.0, %v3250_v35 }
 0x347   :  { %3255 = vrcp.f32 %v1189_v43 }
 0x34e   :  { %v3252_v37 = vpop.eup %3251 }
 0x34f   :  { %v1198_v38 = vmul.f32 %v3252_v37, %v3248_v34  ;;  %v3254_v41 = vpop.eup %3253 }
 0x350   :  { %v1197_v47 = vmul.f32 %v3254_v41, %v4313_v52 }
 0x351   :  { %v3256_v46 = vpop.eup %3255 }
 0x352   :  { %v4355_v63 = vadd.f32 %v1198_v38, %v1197_v47 }
 0x354   :  { %3257 = vtanh.f32 %v4355_v63 }
 0x35e   :  { %v3258_v59 = vpop.eup %3257 }
 0x35f   :  { %v1201_v48 = vmul.f32 %v3258_v59, %v3256_v46 }
 0x361   :  { %1267 = vmatmul.mubr.f32.vlgmr.msra.gmra.mrb[6].mxu1 %v1201_v48  ;;  %1338 = vmatmul.mubr.f32.vlgmr.msra.gmra.mrb[8].mxu0 %v1201_v48 }
 0x362   :  { %2826 = vmatpush1.bf16.msra.mxu1 %v4114_v57  ;;  %2858 = vmatpush1.bf16.msra.mxu0 %v4129_v0 }
 0x363   :  { %2828 = vmatprep.subr.bf16.mxu1 %v4118_v54  ;;  %2860 = vmatprep.subr.bf16.mxu0 %v4138_v5 }
 0x364   :  { %1436 = vmatprep.mubr.f32.mxu1 %v4707_v58  ;;  %1507 = vmatprep.mubr.f32.mxu0 %v4707_v58 }
 0x366   :  { %2830 = vmatpush1.bf16.msra.mxu1 %v4134_v4  ;;  %2862 = vmatpush1.bf16.msra.mxu0 %v4149_v2 }
 0x367   :  { %2832 = vmatprep.subr.bf16.mxu1 %v4143_v3  ;;  %2864 = vmatprep.subr.bf16.mxu0 %v4154_v6 }
 0x36a   :  { %2834 = vmatpush1.bf16.msra.mxu1 %v4159_v7  ;;  %2866 = vmatpush1.bf16.msra.mxu0 %v4169_v9 }
 0x36b   :  { %2836 = vmatprep.subr.bf16.mxu1 %v4164_v8  ;;  %2868 = vmatprep.subr.bf16.mxu0 %v4174_v10 }
 0x36e   :  { %2838 = vmatpush1.bf16.msra.mxu1 %v4179_v11  ;;  %2870 = vmatpush1.bf16.msra.mxu0 %v4189_v13 }
 0x36f   :  { %2840 = vmatprep.subr.bf16.mxu1 %v4184_v12  ;;  %2872 = vmatprep.subr.bf16.mxu0 %v4194_v14 }
 0x372   :  { %2842 = vmatpush1.bf16.msra.mxu1 %v4199_v15  ;;  %2874 = vmatpush1.bf16.msra.mxu0 %v4209_v17 }
 0x373   :  { %2844 = vmatprep.subr.bf16.mxu1 %v4204_v16  ;;  %2876 = vmatprep.subr.bf16.mxu0 %v4214_v18 }
 0x376   :  { %2846 = vmatpush1.bf16.msra.mxu1 %v4219_v21  ;;  %2878 = vmatpush1.bf16.msra.mxu0 %v4229_v27 }
 0x377   :  { %2848 = vmatprep.subr.bf16.mxu1 %v4224_v24  ;;  %2880 = vmatprep.subr.bf16.mxu0 %v4234_v30 }
 0x37a   :  { %2850 = vmatpush1.bf16.msra.mxu1 %v4239_v33  ;;  %2882 = vmatpush1.bf16.msra.mxu0 %v4249_v39 }
 0x37b   :  { %2852 = vmatprep.subr.bf16.mxu1 %v4244_v36  ;;  %2884 = vmatprep.subr.bf16.mxu0 %v4254_v45 }
 0x37e   :  { %2854 = vmatpush1.bf16.msra.mxu1 %v4259_v42  ;;  %2886 = vmatpush1.bf16.msra.mxu0 %v4265_v55 }
 0x37f   :  { %2888 = vmatprep.subr.bf16.mxu1 %v4110_v51  ;;  %2920 = vmatprep.subr.bf16.mxu0 %v4125_v1 }
 0x434   :  { %v1268_v52 = vpop.f32.mrb[6].mxu1  ;;  %v1339_v53 = vpop.f32.mrb[8].mxu0 }
 0x435   :  { %v3155_v60 = vadd.f32 %v1268_v52, %v4730_v61  ;;  %v1270_v40 = vpop.f32.mrb[7].mxu1  ;;  %v1341_v62 = vpop.f32.mrb[9].mxu0  ;;  %v3169_v23 = vadd.f32 %v1339_v53, %v4096_v49 }
 0x436   :  { %v3156_v19 = vadd.f32 %v1270_v40, %v4731_v50  ;;  %v3170_v25 = vadd.f32 %v1341_v62, %v4099_v44 }
 0x437   :  { %v2426_v20 = vmul.f32 -1.442695, %v3155_v60  ;;  %v2428_v26 = vmul.f32 -1.442695, %v3169_v23 }
 0x438   :  { %v2427_v22 = vmul.f32 -1.442695, %v3156_v19 }
 0x439   :  { %3259 = vpow2.f32 %v2426_v20 }
 0x43a   :  { %3261 = vpow2.f32 %v2427_v22 }
 0x43b   :  { %3263 = vtanh.f32 %v3170_v25 }
 0x43c   :  { %3265 = vpow2.f32 %v2428_v26 }
 0x443   :  { %v3260_v28 = vpop.eup %3259 }
 0x444   :  { %v1357_v29 = vadd.f32 1.0, %v3260_v28  ;;  %v3262_v31 = vpop.eup %3261 }
 0x445   :  { %v1358_v32 = vadd.f32 1.0, %v3262_v31  ;;  %v3264_v34 = vpop.eup %3263 }
 0x446   :  { %3267 = vrcp.f32 %v1357_v29  ;;  %v3266_v35 = vpop.eup %3265 }
 0x447   :  { %3269 = vrcp.f32 %v1358_v32  ;;  %v1359_v43 = vadd.f32 1.0, %v3266_v35 }
 0x449   :  { %3271 = vrcp.f32 %v1359_v43 }
 0x450   :  { %v3268_v37 = vpop.eup %3267 }
 0x451   :  { %v1368_v38 = vmul.f32 %v3268_v37, %v3264_v34  ;;  %v3270_v41 = vpop.eup %3269 }
 0x452   :  { %v1367_v47 = vmul.f32 %v3270_v41, %v4355_v63 }
 0x453   :  { %v3272_v59 = vpop.eup %3271 }
 0x454   :  { %v4397_v46 = vadd.f32 %v1368_v38, %v1367_v47 }
 0x456   :  { %3273 = vtanh.f32 %v4397_v46 }
 0x460   :  { %v3274_v48 = vpop.eup %3273 }
 0x461   :  { %v1371_v52 = vmul.f32 %v3274_v48, %v3272_v59 }
 0x463   :  { %1437 = vmatmul.mubr.f32.vlgmr.msra.gmra.mrb[8].mxu1 %v1371_v52  ;;  %1508 = vmatmul.mubr.f32.vlgmr.msra.gmra.mrb[10].mxu0 %v1371_v52 }
 0x464   :  { %2890 = vmatpush1.bf16.msra.mxu1 %v4114_v57  ;;  %2922 = vmatpush1.bf16.msra.mxu0 %v4129_v0 }
 0x465   :  { %2892 = vmatprep.subr.bf16.mxu1 %v4118_v54  ;;  %2924 = vmatprep.subr.bf16.mxu0 %v4138_v5 }
 0x466   :  { %1606 = vmatprep.mubr.f32.mxu1 %v4707_v58  ;;  %1677 = vmatprep.mubr.f32.mxu0 %v4707_v58 }
 0x468   :  { %2894 = vmatpush1.bf16.msra.mxu1 %v4134_v4  ;;  %2926 = vmatpush1.bf16.msra.mxu0 %v4149_v2 }
 0x469   :  { %2896 = vmatprep.subr.bf16.mxu1 %v4143_v3  ;;  %2928 = vmatprep.subr.bf16.mxu0 %v4154_v6 }
 0x46c   :  { %2898 = vmatpush1.bf16.msra.mxu1 %v4159_v7  ;;  %2930 = vmatpush1.bf16.msra.mxu0 %v4169_v9 }
 0x46d   :  { %2900 = vmatprep.subr.bf16.mxu1 %v4164_v8  ;;  %2932 = vmatprep.subr.bf16.mxu0 %v4174_v10 }
 0x470   :  { %2902 = vmatpush1.bf16.msra.mxu1 %v4179_v11  ;;  %2934 = vmatpush1.bf16.msra.mxu0 %v4189_v13 }
 0x471   :  { %2904 = vmatprep.subr.bf16.mxu1 %v4184_v12  ;;  %2936 = vmatprep.subr.bf16.mxu0 %v4194_v14 }
 0x474   :  { %2906 = vmatpush1.bf16.msra.mxu1 %v4199_v15  ;;  %2938 = vmatpush1.bf16.msra.mxu0 %v4209_v17 }
 0x475   :  { %2908 = vmatprep.subr.bf16.mxu1 %v4204_v16  ;;  %2940 = vmatprep.subr.bf16.mxu0 %v4214_v18 }
 0x478   :  { %2910 = vmatpush1.bf16.msra.mxu1 %v4219_v21  ;;  %2942 = vmatpush1.bf16.msra.mxu0 %v4229_v27 }
 0x479   :  { %2912 = vmatprep.subr.bf16.mxu1 %v4224_v24  ;;  %2944 = vmatprep.subr.bf16.mxu0 %v4234_v30 }
 0x47c   :  { %2914 = vmatpush1.bf16.msra.mxu1 %v4239_v33  ;;  %2946 = vmatpush1.bf16.msra.mxu0 %v4249_v39 }
 0x47d   :  { %2916 = vmatprep.subr.bf16.mxu1 %v4244_v36  ;;  %2948 = vmatprep.subr.bf16.mxu0 %v4254_v45 }
 0x480   :  { %2918 = vmatpush1.bf16.msra.mxu1 %v4259_v42  ;;  %2950 = vmatpush1.bf16.msra.mxu0 %v4265_v55 }
 0x481   :  { %2952 = vmatprep.subr.bf16.mxu1 %v4110_v51  ;;  %2984 = vmatprep.subr.bf16.mxu0 %v4125_v1 }
 0x536   :  { %v1438_v63 = vpop.f32.mrb[8].mxu1  ;;  %v1509_v53 = vpop.f32.mrb[10].mxu0 }
 0x537   :  { %v3157_v60 = vadd.f32 %v1438_v63, %v4730_v61  ;;  %v1440_v40 = vpop.f32.mrb[9].mxu1  ;;  %v1511_v62 = vpop.f32.mrb[11].mxu0  ;;  %v3171_v23 = vadd.f32 %v1509_v53, %v4096_v49 }
 0x538   :  { %v3158_v19 = vadd.f32 %v1440_v40, %v4731_v50  ;;  %v3172_v25 = vadd.f32 %v1511_v62, %v4099_v44 }
 0x539   :  { %v2429_v20 = vmul.f32 -1.442695, %v3157_v60  ;;  %v2431_v26 = vmul.f32 -1.442695, %v3171_v23 }
 0x53a   :  { %v2430_v22 = vmul.f32 -1.442695, %v3158_v19 }
 0x53b   :  { %3275 = vpow2.f32 %v2429_v20 }
 0x53c   :  { %3277 = vpow2.f32 %v2430_v22 }
 0x53d   :  { %3279 = vtanh.f32 %v3172_v25 }
 0x53e   :  { %3281 = vpow2.f32 %v2431_v26 }
 0x545   :  { %v3276_v28 = vpop.eup %3275 }
 0x546   :  { %v1527_v29 = vadd.f32 1.0, %v3276_v28  ;;  %v3278_v31 = vpop.eup %3277 }
 0x547   :  { %v1528_v32 = vadd.f32 1.0, %v3278_v31  ;;  %v3280_v34 = vpop.eup %3279 }
 0x548   :  { %3283 = vrcp.f32 %v1527_v29  ;;  %v3282_v35 = vpop.eup %3281 }
 0x549   :  { %3285 = vrcp.f32 %v1528_v32  ;;  %v1529_v43 = vadd.f32 1.0, %v3282_v35 }
 0x54b   :  { %3287 = vrcp.f32 %v1529_v43 }
 0x552   :  { %v3284_v37 = vpop.eup %3283 }
 0x553   :  { %v1538_v38 = vmul.f32 %v3284_v37, %v3280_v34  ;;  %v3286_v41 = vpop.eup %3285 }
 0x554   :  { %v1537_v47 = vmul.f32 %v3286_v41, %v4397_v46 }
 0x555   :  { %v3288_v48 = vpop.eup %3287 }
 0x556   :  { %v4439_v59 = vadd.f32 %v1538_v38, %v1537_v47 }
 0x558   :  { %3289 = vtanh.f32 %v4439_v59 }
 0x562   :  { %v3290_v52 = vpop.eup %3289 }
 0x563   :  { %v1541_v63 = vmul.f32 %v3290_v52, %v3288_v48 }
 0x565   :  { %1607 = vmatmul.mubr.f32.vlgmr.msra.gmra.mrb[10].mxu1 %v1541_v63  ;;  %1678 = vmatmul.mubr.f32.vlgmr.msra.gmra.mrb[12].mxu0 %v1541_v63 }
 0x566   :  { %2954 = vmatpush1.bf16.msra.mxu1 %v4114_v57  ;;  %2986 = vmatpush1.bf16.msra.mxu0 %v4129_v0 }
 0x567   :  { %2956 = vmatprep.subr.bf16.mxu1 %v4118_v54  ;;  %2988 = vmatprep.subr.bf16.mxu0 %v4138_v5 }
 0x568   :  { %1776 = vmatprep.mubr.f32.mxu1 %v4707_v58  ;;  %1847 = vmatprep.mubr.f32.mxu0 %v4707_v58 }
 0x56a   :  { %2958 = vmatpush1.bf16.msra.mxu1 %v4134_v4  ;;  %2990 = vmatpush1.bf16.msra.mxu0 %v4149_v2 }
 0x56b   :  { %2960 = vmatprep.subr.bf16.mxu1 %v4143_v3  ;;  %2992 = vmatprep.subr.bf16.mxu0 %v4154_v6 }
 0x56e   :  { %2962 = vmatpush1.bf16.msra.mxu1 %v4159_v7  ;;  %2994 = vmatpush1.bf16.msra.mxu0 %v4169_v9 }
 0x56f   :  { %2964 = vmatprep.subr.bf16.mxu1 %v4164_v8  ;;  %2996 = vmatprep.subr.bf16.mxu0 %v4174_v10 }
 0x572   :  { %2966 = vmatpush1.bf16.msra.mxu1 %v4179_v11  ;;  %2998 = vmatpush1.bf16.msra.mxu0 %v4189_v13 }
 0x573   :  { %2968 = vmatprep.subr.bf16.mxu1 %v4184_v12  ;;  %3000 = vmatprep.subr.bf16.mxu0 %v4194_v14 }
 0x576   :  { %2970 = vmatpush1.bf16.msra.mxu1 %v4199_v15  ;;  %3002 = vmatpush1.bf16.msra.mxu0 %v4209_v17 }
 0x577   :  { %2972 = vmatprep.subr.bf16.mxu1 %v4204_v16  ;;  %3004 = vmatprep.subr.bf16.mxu0 %v4214_v18 }
 0x57a   :  { %2974 = vmatpush1.bf16.msra.mxu1 %v4219_v21  ;;  %3006 = vmatpush1.bf16.msra.mxu0 %v4229_v27 }
 0x57b   :  { %2976 = vmatprep.subr.bf16.mxu1 %v4224_v24  ;;  %3008 = vmatprep.subr.bf16.mxu0 %v4234_v30 }
 0x57e   :  { %2978 = vmatpush1.bf16.msra.mxu1 %v4239_v33  ;;  %3010 = vmatpush1.bf16.msra.mxu0 %v4249_v39 }
 0x57f   :  { %2980 = vmatprep.subr.bf16.mxu1 %v4244_v36  ;;  %3012 = vmatprep.subr.bf16.mxu0 %v4254_v45 }
 0x582   :  { %2982 = vmatpush1.bf16.msra.mxu1 %v4259_v42  ;;  %3014 = vmatpush1.bf16.msra.mxu0 %v4265_v55 }
 0x583   :  { %3016 = vmatprep.subr.bf16.mxu1 %v4110_v51  ;;  %3048 = vmatprep.subr.bf16.mxu0 %v4125_v1 }
 0x638   :  { %v1608_v46 = vpop.f32.mrb[10].mxu1  ;;  %v1679_v53 = vpop.f32.mrb[12].mxu0 }
 0x639   :  { %v3159_v60 = vadd.f32 %v1608_v46, %v4730_v61  ;;  %v1610_v40 = vpop.f32.mrb[11].mxu1  ;;  %v1681_v62 = vpop.f32.mrb[13].mxu0  ;;  %v3173_v23 = vadd.f32 %v1679_v53, %v4096_v49 }
 0x63a   :  { %v3160_v19 = vadd.f32 %v1610_v40, %v4731_v50  ;;  %v3174_v25 = vadd.f32 %v1681_v62, %v4099_v44 }
 0x63b   :  { %v2432_v20 = vmul.f32 -1.442695, %v3159_v60  ;;  %v2434_v26 = vmul.f32 -1.442695, %v3173_v23 }
 0x63c   :  { %v2433_v22 = vmul.f32 -1.442695, %v3160_v19 }
 0x63d   :  { %3291 = vpow2.f32 %v2432_v20 }
 0x63e   :  { %3293 = vpow2.f32 %v2433_v22 }
 0x63f   :  { %3295 = vtanh.f32 %v3174_v25 }
 0x640   :  { %3297 = vpow2.f32 %v2434_v26 }
 0x647   :  { %v3292_v51 = vpop.eup %3291 }
 0x648   :  { %v1697_v28 = vadd.f32 1.0, %v3292_v51  ;;  %v3294_v1 = vpop.eup %3293 }
 0x649   :  { %v1698_v29 = vadd.f32 1.0, %v3294_v1  ;;  %v3296_v31 = vpop.eup %3295 }
 0x64a   :  { %3299 = vrcp.f32 %v1697_v28  ;;  %v3298_v32 = vpop.eup %3297 }
 0x64b   :  { %3301 = vrcp.f32 %v1698_v29  ;;  %v1699_v38 = vadd.f32 1.0, %v3298_v32  ;;  %v4732_v32 = vmov 0.0|0.0  }
 0x64d   :  { %3303 = vrcp.f32 %v1699_v38  ;;  %v4735_v38 = vld [vmem:[#allocation33_spill] sm:$0xff] }
 0x654   :  { %v3300_v34 = vpop.eup %3299 }
 0x655   :  { %v1708_v35 = vmul.f32 %v3300_v34, %v3296_v31  ;;  %v3302_v37 = vpop.eup %3301  ;;  %v4733_v34 = vld [vmem:[#allocation49_spill] sm:$0xff] }
 0x656   :  { %v1707_v41 = vmul.f32 %v3302_v37, %v4439_v59 }
 0x657   :  { %v3304_v47 = vpop.eup %3303 }
 0x658   :  { %v4481_v43 = vadd.f32 %v1708_v35, %v1707_v41  ;;  %v4734_v35 = vld [vmem:[#allocation50_spill] sm:$0xff] }
 0x659   :  { %v3080_v37 = vpack.c.bf16 %v4734_v35, %v4733_v34  ;;  %v4736_v41 = vld [vmem:[#allocation34_spill] sm:$0xff] }
 0x65a   :  { %3305 = vtanh.f32 %v4481_v43 }
 0x664   :  { %v3306_v48 = vpop.eup %3305 }
 0x665   :  { %v1711_v52 = vmul.f32 %v3306_v48, %v3304_v47 }
 0x667   :  { %1777 = vmatmul.mubr.f32.vlgmr.msra.gmra.mrb[12].mxu1 %v1711_v52  ;;  %1848 = vmatmul.mubr.f32.vlgmr.msra.gmra.mrb[14].mxu0 %v1711_v52 }
 0x668   :  { %3018 = vmatpush1.bf16.msra.mxu1 %v4114_v57  ;;  %3050 = vmatpush1.bf16.msra.mxu0 %v4129_v0 }
 0x669   :  { %3020 = vmatprep.subr.bf16.mxu1 %v4118_v54  ;;  %3052 = vmatprep.subr.bf16.mxu0 %v4138_v5 }
 0x66a   :  { %1946 = vmatprep.mubr.f32.mxu1 %v4707_v58  ;;  %2017 = vmatprep.mubr.f32.mxu0 %v4707_v58 }
 0x66c   :  { %3022 = vmatpush1.bf16.msra.mxu1 %v4134_v4  ;;  %3054 = vmatpush1.bf16.msra.mxu0 %v4149_v2 }
 0x66d   :  { %3024 = vmatprep.subr.bf16.mxu1 %v4143_v3  ;;  %3056 = vmatprep.subr.bf16.mxu0 %v4154_v6 }
 0x670   :  { %3026 = vmatpush1.bf16.msra.mxu1 %v4159_v7  ;;  %3058 = vmatpush1.bf16.msra.mxu0 %v4169_v9 }
 0x671   :  { %3028 = vmatprep.subr.bf16.mxu1 %v4164_v8  ;;  %3060 = vmatprep.subr.bf16.mxu0 %v4174_v10 }
 0x674   :  { %3030 = vmatpush1.bf16.msra.mxu1 %v4179_v11  ;;  %3062 = vmatpush1.bf16.msra.mxu0 %v4189_v13 }
 0x675   :  { %3032 = vmatprep.subr.bf16.mxu1 %v4184_v12  ;;  %3064 = vmatprep.subr.bf16.mxu0 %v4194_v14 }
 0x678   :  { %3034 = vmatpush1.bf16.msra.mxu1 %v4199_v15  ;;  %3066 = vmatpush1.bf16.msra.mxu0 %v4209_v17 }
 0x679   :  { %3036 = vmatprep.subr.bf16.mxu1 %v4204_v16  ;;  %3068 = vmatprep.subr.bf16.mxu0 %v4214_v18 }
 0x67c   :  { %3038 = vmatpush1.bf16.msra.mxu1 %v4219_v21  ;;  %3070 = vmatpush1.bf16.msra.mxu0 %v4229_v27 }
 0x67d   :  { %3040 = vmatprep.subr.bf16.mxu1 %v4224_v24  ;;  %3072 = vmatprep.subr.bf16.mxu0 %v4234_v30 }
 0x680   :  { %3042 = vmatpush1.bf16.msra.mxu1 %v4239_v33  ;;  %3074 = vmatpush1.bf16.msra.mxu0 %v4249_v39 }
 0x681   :  { %3044 = vmatprep.subr.bf16.mxu1 %v4244_v36  ;;  %3076 = vmatprep.subr.bf16.mxu0 %v4254_v45 }
 0x684   :  { %3046 = vmatpush1.bf16.msra.mxu1 %v4259_v42  ;;  %3078 = vmatpush1.bf16.msra.mxu0 %v4265_v55 }
 0x685   :  { %3079 = vmatprep.subr.bf16.mxu1 %v4732_v32  ;;  %3103 = vmatprep.subr.bf16.mxu0 %v4732_v32 }
 0x73a   :  { %v1778_v57 = vpop.f32.mrb[12].mxu1  ;;  %v1849_v54 = vpop.f32.mrb[14].mxu0 }
 0x73b   :  { %v3161_v0 = vadd.f32 %v1778_v57, %v4730_v61  ;;  %v1780_v4 = vpop.f32.mrb[13].mxu1  ;;  %v1851_v5 = vpop.f32.mrb[15].mxu0  ;;  %v3175_v7 = vadd.f32 %v1849_v54, %v4096_v49 }
 0x73c   :  { %v3162_v3 = vadd.f32 %v1780_v4, %v4731_v50  ;;  %v3176_v8 = vadd.f32 %v1851_v5, %v4099_v44 }
 0x73d   :  { %v2435_v2 = vmul.f32 -1.442695, %v3161_v0  ;;  %v2437_v9 = vmul.f32 -1.442695, %v3175_v7 }
 0x73e   :  { %v2436_v6 = vmul.f32 -1.442695, %v3162_v3 }
 0x73f   :  { %3307 = vpow2.f32 %v2435_v2 }
 0x740   :  { %3309 = vpow2.f32 %v2436_v6 }
 0x741   :  { %3311 = vtanh.f32 %v3176_v8 }
 0x742   :  { %3313 = vpow2.f32 %v2437_v9 }
 0x749   :  { %v3308_v10 = vpop.eup %3307 }
 0x74a   :  { %v1867_v11 = vadd.f32 1.0, %v3308_v10  ;;  %v3310_v12 = vpop.eup %3309 }
 0x74b   :  { %v1868_v13 = vadd.f32 1.0, %v3310_v12  ;;  %v3312_v14 = vpop.eup %3311 }
 0x74c   :  { %3315 = vrcp.f32 %v1867_v11  ;;  %v3314_v15 = vpop.eup %3313 }
 0x74d   :  { %3317 = vrcp.f32 %v1868_v13  ;;  %v1869_v21 = vadd.f32 1.0, %v3314_v15 }
 0x74f   :  { %3319 = vrcp.f32 %v1869_v21 }
 0x756   :  { %v3316_v16 = vpop.eup %3315 }
 0x757   :  { %v1878_v17 = vmul.f32 %v3316_v16, %v3312_v14  ;;  %v3318_v18 = vpop.eup %3317 }
 0x758   :  { %v1877_v24 = vmul.f32 %v3318_v18, %v4481_v43  ;;  %v3104_v43 = vpack.c.bf16 %v4736_v41, %v4735_v38 }
 0x759   :  { %v3320_v30 = vpop.eup %3319 }
 0x75a   :  { %v1879_v27 = vadd.f32 %v1878_v17, %v1877_v24 }
 0x75c   :  { %3321 = vtanh.f32 %v1879_v27 }
 0x766   :  { %v3322_v33 = vpop.eup %3321 }
 0x767   :  { %v1881_v36 = vmul.f32 %v3322_v33, %v3320_v30 }
 0x769   :  { %1947 = vmatmul.mubr.f32.vlgmr.msra.gmra.mrb[14].mxu1 %v1881_v36  ;;  %2018 = vmatmul.mubr.f32.vlgmr.msra.gmra.mrb[16].mxu0 %v1881_v36 }
 0x83c   :  { %v1948_v39 = vpop.f32.mrb[14].mxu1  ;;  %v2019_v45 = vpop.f32.mrb[16].mxu0 }
 0x83d   :  { %v3163_v42 = vadd.f32 %v1948_v39, %v4730_v61  ;;  %v1950_v55 = vpop.f32.mrb[15].mxu1  ;;  %v2021_v59 = vpop.f32.mrb[17].mxu0  ;;  %v3177_v60 = vadd.f32 %v2019_v45, %v4096_v49 }
 0x83e   :  { %v3164_v63 = vadd.f32 %v1950_v55, %v4731_v50  ;;  %v3178_v40 = vadd.f32 %v2021_v59, %v4099_v44 }
 0x83f   :  { %v2438_v46 = vmul.f32 -1.442695, %v3163_v42  ;;  %v2440_v62 = vmul.f32 -1.442695, %v3177_v60 }
 0x840   :  { %v2439_v53 = vmul.f32 -1.442695, %v3164_v63 }
 0x841   :  { %3323 = vpow2.f32 %v2438_v46 }
 0x842   :  { %3325 = vpow2.f32 %v2439_v53 }
 0x843   :  { %3327 = vtanh.f32 %v3178_v40 }
 0x844   :  { %3329 = vpow2.f32 %v2440_v62 }
 0x84b   :  { %v3324_v19 = vpop.eup %3323 }
 0x84c   :  { %v2037_v20 = vadd.f32 1.0, %v3324_v19  ;;  %v3326_v22 = vpop.eup %3325 }
 0x84d   :  { %v2038_v61 = vadd.f32 1.0, %v3326_v22  ;;  %v3328_v23 = vpop.eup %3327 }
 0x84e   :  { %3331 = vrcp.f32 %v2037_v20  ;;  %v3330_v25 = vpop.eup %3329 }
 0x84f   :  { %3333 = vrcp.f32 %v2038_v61  ;;  %v2039_v28 = vadd.f32 1.0, %v3330_v25 }
 0x851   :  { %3335 = vrcp.f32 %v2039_v28 }
 0x858   :  { %v3332_v50 = vpop.eup %3331 }
 0x859   :  { %v2048_v26 = vmul.f32 %v3332_v50, %v3328_v23  ;;  %v3334_v51 = vpop.eup %3333 }
 0x85a   :  { %v2047_v1 = vmul.f32 %v3334_v51, %v1879_v27 }
 0x85b   :  { %v3336_v44 = vpop.eup %3335 }
 0x85c   :  { %v2049_v29 = vadd.f32 %v2048_v26, %v2047_v1 }
 0x85e   :  { %3337 = vtanh.f32 %v2049_v29 }
 0x868   :  { %v3338_v49 = vpop.eup %3337 }
 0x869   :  { %v2051_v31 = vmul.f32 %v3338_v49, %v3336_v44 }
 0x86a   :  { %3341 = dma.done.wait [#allocation5 + $0x1], 4096 }
 0x86b   :  { %3342 = vsyncadd [#allocation5 + $0x1], 4294963200  ;;  %2543 = vmatprep.mubr.msk.f32.mxu1 %vm3348_vm4, %v4707_v58  ;;  %3081 = vmatpush3.bf16.msra.mxu1 %v3080_v37  ;;  %v4737_v47 = vld [vmem:[#allocation51_spill] sm:$0xff]  ;;  %v4738_v48 = vld [vmem:[#allocation52_spill] sm:$0xff]  ;;  %v4765_v22 = vmax.f32 %v4094_v56, 0.0 }
 0x86c   :  { %3105 = vmatpush3.bf16.msra.mxu0 %v3104_v43  ;;  %v3083_v52 = vpack.c.bf16 %v4738_v48, %v4737_v47  ;;  %v4739_v57 = vld [vmem:[#allocation35_spill] sm:$0xff]  ;;  %v4740_v54 = vld [vmem:[#allocation36_spill] sm:$0xff]  ;;  %3082 = vmatprep.subr.bf16.mxu1 %v4732_v32  ;;  %v4741_v4 = vld [vmem:[#allocation53_spill] sm:$0xff] }
 0x86d   :  { %v3107_v0 = vpack.c.bf16 %v4740_v54, %v4739_v57  ;;  %3106 = vmatprep.subr.bf16.mxu0 %v4732_v32  ;;  %2578 = vmatprep.mubr.msk.f32.mxu0 %vm3348_vm4, %v4707_v58  ;;  %v4742_v5 = vld [vmem:[#allocation54_spill] sm:$0xff]  ;;  %v4743_v2 = vld [vmem:[#allocation37_spill] sm:$0xff]  ;;  %v4745_v8 = vld [vmem:[#allocation55_spill] sm:$0xff] }
 0x86e   :  { %v3086_v3 = vpack.c.bf16 %v4742_v5, %v4741_v4  ;;  %v4744_v6 = vld [vmem:[#allocation38_spill] sm:$0xff]  ;;  %v4746_v9 = vld [vmem:[#allocation56_spill] sm:$0xff]  ;;  %v4747_v11 = vld [vmem:[#allocation39_spill] sm:$0xff] }
 0x86f   :  { %3084 = vmatpush3.bf16.msra.mxu1 %v3083_v52  ;;  %v3110_v7 = vpack.c.bf16 %v4744_v6, %v4743_v2  ;;  %v3089_v10 = vpack.c.bf16 %v4746_v9, %v4745_v8  ;;  %v4748_v12 = vld [vmem:[#allocation40_spill] sm:$0xff]  ;;  %v4749_v14 = vld [vmem:[#allocation57_spill] sm:$0xff]  ;;  %v4750_v15 = vld [vmem:[#allocation58_spill] sm:$0xff] }
 0x870   :  { %3108 = vmatpush3.bf16.msra.mxu0 %v3107_v0  ;;  %3085 = vmatprep.subr.bf16.mxu1 %v4732_v32  ;;  %v3113_v13 = vpack.c.bf16 %v4748_v12, %v4747_v11  ;;  %v3092_v16 = vpack.c.bf16 %v4750_v15, %v4749_v14  ;;  %v4751_v17 = vld [vmem:[#allocation41_spill] sm:$0xff]  ;;  %v4752_v18 = vld [vmem:[#allocation42_spill] sm:$0xff]  ;;  %v4753_v24 = vld [vmem:[#allocation59_spill] sm:$0xff] }
 0x871   :  { %3109 = vmatprep.subr.bf16.mxu0 %v4732_v32  ;;  %v3116_v21 = vpack.c.bf16 %v4752_v18, %v4751_v17  ;;  %v4754_v27 = vld [vmem:[#allocation60_spill] sm:$0xff]  ;;  %v4755_v33 = vld [vmem:[#allocation43_spill] sm:$0xff]  ;;  %v4757_v45 = vld [vmem:[#allocation61_spill] sm:$0xff] }
 0x872   :  { %v3095_v30 = vpack.c.bf16 %v4754_v27, %v4753_v24  ;;  %v4756_v36 = vld [vmem:[#allocation44_spill] sm:$0xff]  ;;  %v4758_v42 = vld [vmem:[#allocation62_spill] sm:$0xff]  ;;  %v4759_v59 = vld [vmem:[#allocation45_spill] sm:$0xff] }
 0x873   :  { %3087 = vmatpush3.bf16.msra.mxu1 %v3086_v3  ;;  %v3119_v39 = vpack.c.bf16 %v4756_v36, %v4755_v33  ;;  %v3098_v55 = vpack.c.bf16 %v4758_v42, %v4757_v45  ;;  %v4760_v63 = vld [vmem:[#allocation46_spill] sm:$0xff]  ;;  %v4761_v53 = vld [vmem:[#allocation63_spill] sm:$0xff]  ;;  %v4762_v60 = vld [vmem:[#allocation64_spill] sm:$0xff] }
 0x874   :  { %3111 = vmatpush3.bf16.msra.mxu0 %v3110_v7  ;;  %3088 = vmatprep.subr.bf16.mxu1 %v4732_v32  ;;  %v3122_v46 = vpack.c.bf16 %v4760_v63, %v4759_v59  ;;  %v3101_v40 = vpack.c.bf16 %v4762_v60, %v4761_v53  ;;  %v4763_v62 = vld [vmem:[#allocation47_spill] sm:$0xff]  ;;  %v4764_v19 = vld [vmem:[#allocation48_spill] sm:$0xff]  ;;  %v4766_v51 = vld [vmem:[#allocation81_spill] sm:$0xff] }
 0x875   :  { %3112 = vmatprep.subr.bf16.mxu0 %v4732_v32  ;;  %v3125_v20 = vpack.c.bf16 %v4764_v19, %v4763_v62  ;;  %v4767_v29 = vld [vmem:[#allocation65_spill] sm:$0xff]  ;;  %v4768_v44 = vld [vmem:[#allocation66_spill] sm:$0xff] }
 0x876   :  { %v3128_v49 = vpack.c.bf16 %v4768_v44, %v4767_v29 }
 0x877   :  { %3090 = vmatpush3.bf16.msra.mxu1 %v3089_v10 }
 0x878   :  { %3114 = vmatpush3.bf16.msra.mxu0 %v3113_v13  ;;  %3091 = vmatprep.subr.bf16.mxu1 %v4732_v32 }
 0x879   :  { %3115 = vmatprep.subr.bf16.mxu0 %v4732_v32 }
 0x87b   :  { %3093 = vmatpush3.bf16.msra.mxu1 %v3092_v16 }
 0x87c   :  { %3117 = vmatpush3.bf16.msra.mxu0 %v3116_v21  ;;  %3094 = vmatprep.subr.bf16.mxu1 %v4732_v32 }
 0x87d   :  { %3118 = vmatprep.subr.bf16.mxu0 %v4732_v32 }
 0x87f   :  { %3096 = vmatpush3.bf16.msra.mxu1 %v3095_v30 }
 0x880   :  { %3120 = vmatpush3.bf16.msra.mxu0 %v3119_v39  ;;  %3097 = vmatprep.subr.bf16.mxu1 %v4732_v32 }
 0x881   :  { %3121 = vmatprep.subr.bf16.mxu0 %v4732_v32 }
 0x883   :  { %3099 = vmatpush3.bf16.msra.mxu1 %v3098_v55 }
 0x884   :  { %3123 = vmatpush3.bf16.msra.mxu0 %v3122_v46  ;;  %3100 = vmatprep.subr.bf16.mxu1 %v4732_v32 }
 0x885   :  { %3124 = vmatprep.subr.bf16.mxu0 %v4732_v32 }
 0x887   :  { %3102 = vmatpush3.bf16.msra.mxu1 %v3101_v40 }
 0x888   :  { %3126 = vmatpush3.bf16.msra.mxu0 %v3125_v20  ;;  %3127 = vmatprep.subr.bf16.mxu1 %v4732_v32 }
 0x88a   :  { %2544 = vmatmul.mubr.f32.vlgmr.msra.gmra.mrb[16].mxu1 %v2051_v31 }
 0x88b   :  { %2579 = vmatmul.mubr.f32.vlgmr.msra.gmra.mrb[18].mxu0 %v4765_v22 }
 0x95d   :  { %v2153_v61 = vpop.f32.mrb[16].mxu1 }
 0x95e   :  { %v2223_v23 = vpop.f32.mrb[18].mxu0  ;;  %v2545_v50 = vpop.f32.mrb[17].mxu1 }
 0x95f   :  { %v2224_v25 = vadd.f32 %v2223_v23, %v2153_v61  ;;  %v2580_v26 = vpop.f32.mrb[19].mxu0 }
 0x961   :  { %v2233_v28 = vadd.f32 %v4766_v51, %v2224_v25 }
 0x963   :  { %v2234_v1 = vmax.f32 %v2233_v28, 0.0 }
 0x964   :  { %3343 = dma.done.wait [#allocation5 + $0x2], 2048 }
 0x965   :  { %3344 = vsyncadd [#allocation5 + $0x2], 4294965248  ;;  %2613 = vmatprep.mubr.msk.f32.mxu1 %vm3348_vm4, %v4707_v58  ;;  %3129 = vmatpush3.bf16.msra.mxu1 %v3128_v49  ;;  %v4769_v56 = vld [vmem:[#allocation67_spill] sm:$0xff]  ;;  %v4770_v31 = vld [vmem:[#allocation68_spill] sm:$0xff]  ;;  %v2342_v15 = vstv %s4625_s9  ;;  %vm2344_vm7 = vcmask 7168  }
 0x966   :  { %v3131_v34 = vpack.c.bf16 %v4770_v31, %v4769_v56  ;;  %3130 = vmatprep.subr.bf16.mxu1 %v4732_v32  ;;  %v4771_v35 = vld [vmem:[#allocation69_spill] sm:$0xff]  ;;  %v4772_v37 = vld [vmem:[#allocation70_spill] sm:$0xff]  ;;  %v4773_v41 = vld [vmem:[#allocation71_spill] sm:$0xff] }
 0x967   :  { %v3134_v38 = vpack.c.bf16 %v4772_v37, %v4771_v35  ;;  %v4774_v43 = vld [vmem:[#allocation72_spill] sm:$0xff]  ;;  %v4775_v58 = vld [vmem:[#allocation73_spill] sm:$0xff]  ;;  %v4776_v48 = vld [vmem:[#allocation74_spill] sm:$0xff] }
 0x968   :  { %v3137_v47 = vpack.c.bf16 %v4774_v43, %v4773_v41  ;;  %v3140_v52 = vpack.c.bf16 %v4776_v48, %v4775_v58  ;;  %v4777_v57 = vld [vmem:[#allocation75_spill] sm:$0xff]  ;;  %v4778_v54 = vld [vmem:[#allocation76_spill] sm:$0xff]  ;;  %v4779_v4 = vld [vmem:[#allocation77_spill] sm:$0xff] }
 0x969   :  { %3132 = vmatpush3.bf16.msra.mxu1 %v3131_v34  ;;  %v3143_v0 = vpack.c.bf16 %v4778_v54, %v4777_v57  ;;  %v4780_v5 = vld [vmem:[#allocation78_spill] sm:$0xff]  ;;  %v4781_v2 = vld [vmem:[#allocation79_spill] sm:$0xff]  ;;  %v4782_v6 = vld [vmem:[#allocation80_spill] sm:$0xff] }
 0x96a   :  { %3133 = vmatprep.subr.bf16.mxu1 %v4732_v32  ;;  %v3146_v3 = vpack.c.bf16 %v4780_v5, %v4779_v4  ;;  %v3149_v7 = vpack.c.bf16 %v4782_v6, %v4781_v2  ;;  %v4783_v9 = vld [vmem:[#allocation82_spill] sm:$0xff]  ;;  %v2443_v12 = vld [vmem:[%s4623_s7] ss:$0 sm:$0xff] }
 0x96d   :  { %3135 = vmatpush3.bf16.msra.mxu1 %v3134_v38 }
 0x96e   :  { %3136 = vmatprep.subr.bf16.mxu1 %v4732_v32 }
 0x971   :  { %3138 = vmatpush3.bf16.msra.mxu1 %v3137_v47 }
 0x972   :  { %3139 = vmatprep.subr.bf16.mxu1 %v4732_v32 }
 0x975   :  { %3141 = vmatpush3.bf16.msra.mxu1 %v3140_v52 }
 0x976   :  { %3142 = vmatprep.subr.bf16.mxu1 %v4732_v32 }
 0x979   :  { %3144 = vmatpush3.bf16.msra.mxu1 %v3143_v0 }
 0x97a   :  { %3145 = vmatprep.subr.bf16.mxu1 %v4732_v32 }
 0x97d   :  { %3147 = vmatpush3.bf16.msra.mxu1 %v3146_v3 }
 0x97e   :  { %3148 = vmatprep.subr.bf16.mxu1 %v4732_v32 }
 0x981   :  { %3150 = vmatpush3.bf16.msra.mxu1 %v3149_v7 }
 0x984   :  { %2614 = vmatmul.mubr.f32.vlgmr.msra.gmra.mrb[18].mxu1 %v2234_v1 }
 0xa57   :  { %v2326_v8 = vpop.f32.mrb[18].mxu1 }
 0xa58   :  { %v2327_v10 = vadd.f32 %v4783_v9, %v2326_v8  ;;  %v2615_v11 = vpop.f32.mrb[19].mxu1 }
 0xa5a   :  { %v2330_v13 = vmax.f32 %v2327_v10, 0.0 }
 0xa5c   :  { %v2338_v14 = vmul.f32 %v2443_v12, %v2330_v13 }
 0xa5e   :  { %2339 = vadd.xlane.f32.xlu0 %v2338_v14 }
 0xaeb   :  { %v2340_v16 = vpop.xlane.xlu0 %2339 }
 0xaec   :  { %v2343_v32 = vadd.f32 %v2342_v15, %v2340_v16 }
 0xaee   :  { %2345 = vst.msk [vmem:[%s4626_s10] sm:$0xff] %vm2344_vm7, %v2343_v32 }
 0xaef   :  { %2350 = vsyncmov [#allocation5] }
 0xaf2   :  { %s2351_s13 = vpop.sfrf %2350 }
 0xaf3   :  { %p2444_p0 = scmp.ne.s32.totalorder %s2351_s13, 0 }
 0xaf5   :  { %2355 = shalt.err (%p2444_p0)  }
 0xaf6   :  { %2357 = vsyncmov [#allocation5 + $0x1] }
 0xaf9   :  { %s2358_s7 = vpop.sfrf %2357 }
 0xafa   :  { %p2445_p1 = scmp.ne.s32.totalorder %s2358_s7, 0 }
 0xafc   :  { %2362 = shalt.err (%p2445_p1)  }
 0xafd   :  { %2364 = vsyncmov [#allocation5 + $0x2] }
 0xb00   :  { %s2365_s14 = vpop.sfrf %2364 }
 0xb01   :  { %p2446_p2 = scmp.ne.s32.totalorder %s2365_s14, 0 }
 0xb03   :  { %2369 = shalt.err (%p2446_p2)  }

</bundles_post_ra>
